<compile_context>
chip_gen: v7x
topology: tpu7x:2x2x1
jax: 0.10.0
libtpu: 0.0.40
codegen_flags: <defaults>
</compile_context>

<pallas_src>
import jax
import jax.numpy as jnp
from jax import lax
from jax.experimental import pallas as pl
from jax.experimental.pallas import tpu as pltpu


# ---------------------------------------------------------------------------
# Shared in-kernel helpers
# ---------------------------------------------------------------------------

def _segment_select(seg_ids, segtab_ref, ts, d):
    """Segment embedding via VPU where-chain (tiny NSEG; no MXU, no one-hot)."""
    nseg = segtab_ref.shape[0]
    seg_e = jnp.broadcast_to(segtab_ref[pl.ds(0, 1), :], (ts, d))   # default: segment 0
    for k in range(1, nseg):
        seg_e = jnp.where(seg_ids == k, segtab_ref[pl.ds(k, 1), :], seg_e)
    return seg_e


def _layernorm_affine(e, gamma, beta, eps=1e-12):
    """TF-style LayerNorm (eps inside sqrt), fused single-pass statistics."""
    d = e.shape[-1]
    inv_d = 1.0 / d
    mean = jnp.sum(e, axis=-1, keepdims=True) * inv_d
    mean_sq = jnp.sum(e * e, axis=-1, keepdims=True) * inv_d
    var = jnp.maximum(mean_sq - mean * mean, 0.0)       # clamp: cancellation can go < 0
    xhat = (e - mean) * lax.rsqrt(var + eps)
    return gamma * xhat + beta


# ---------------------------------------------------------------------------
# Path A: HBM-resident token table, per-row DMA gather, cross-step double buffer
# ---------------------------------------------------------------------------

def embeddings_kernel_hbm(x_ids_ref,   # SMEM (scalar prefetch): (B, S) int32 token ids
                          seg_ref,     # VMEM: (1, tS, 1) int32 segment ids for this tile
                          tok_hbm,     # HBM (pl.ANY): (V, D) f32 token-embedding table
                          pos_ref,     # VMEM: (tS, D) f32 position rows for this tile
                          segtab_ref,  # VMEM: (NSEG, D) f32 segment table
                          gamma_ref,   # VMEM: (1, D) f32
                          beta_ref,    # VMEM: (1, D) f32
                          o_ref,       # VMEM out: (1, tS, D) f32
                          tok_buf,     # VMEM scratch: (2, tS, D) f32 (double buffer)
                          sem):        # DMA semaphores: (2,)
    s = pl.program_id(0)
    b = pl.program_id(1)
    nb = pl.num_programs(1)
    ts = o_ref.shape[1]
    d = o_ref.shape[2]

    slot = b % 2

    def issue_rows(batch_idx, dst_slot):
        # Per-row gather HBM -> VMEM; all copies for a slot share sem[dst_slot].
        def body(i, carry):
            tok_id = x_ids_ref[batch_idx, s * ts + i]
            pltpu.make_async_copy(
                tok_hbm.at[pl.ds(tok_id, 1), :],
                tok_buf.at[dst_slot, pl.ds(i, 1), :],
                sem.at[dst_slot]).start()
            return carry
        lax.fori_loop(0, ts, body, 0, unroll=8)

    # Prime the pipeline at the start of each batch sweep.
    @pl.when(b == 0)
    def _():
        issue_rows(0, 0)

    # Prefetch the next batch element's rows into the other slot (hidden behind
    # this step's compute + the pipeline's output writeback).
    @pl.when(b + 1 < nb)
    def _():
        issue_rows(b + 1, 1 - slot)

    # Overlap: segment select + position add while the gather is in flight.
    segs = seg_ref[0]                               # (tS, 1) int32
    base = pos_ref[...] + _segment_select(segs, segtab_ref, ts, d)

    # Single bulk wait: tS copies of D*4 bytes accumulated on sem[slot].
    pltpu.make_async_copy(
        tok_hbm.at[pl.ds(0, ts), :],
        tok_buf.at[slot],
        sem.at[slot]).wait()

    e = tok_buf[slot] + base                        # (tS, D)
    y = _layernorm_affine(e, gamma_ref[...], beta_ref[...])

    # TODO(synk): nn.Dropout omitted — identity in eval/inference mode.
    o_ref[0, :, :] = y


# ---------------------------------------------------------------------------
# Path B: VMEM-resident token table (small tables / v5e / v6e), vld gather
# ---------------------------------------------------------------------------

def embeddings_kernel_vmem(x_ids_ref,   # SMEM: (B, S) int32 token ids
                           seg_ref,     # VMEM: (1, tS, 1) int32
                           tok_tab_ref, # VMEM: (V, D) f32 full table (resident block)
                           pos_ref,     # VMEM: (tS, D) f32
                           segtab_ref,  # VMEM: (NSEG, D) f32
                           gamma_ref,   # VMEM: (1, D) f32
                           beta_ref,    # VMEM: (1, D) f32
                           o_ref,       # VMEM out: (1, tS, D) f32
                           tok_buf):    # VMEM scratch: (tS, D) f32
    s = pl.program_id(0)
    b = pl.program_id(1)
    ts = o_ref.shape[1]
    d = o_ref.shape[2]

    # Gather token rows with dynamic-slice VMEM loads (no HBM DMA descriptors).
    def body(i, carry):
        tok_id = x_ids_ref[b, s * ts + i]
        tok_buf[pl.ds(i, 1), :] = tok_tab_ref[pl.ds(tok_id, 1), :]
        return carry
    lax.fori_loop(0, ts, body, 0, unroll=8)

    segs = seg_ref[0]                               # (tS, 1) int32
    e = tok_buf[...] + pos_ref[...] + _segment_select(segs, segtab_ref, ts, d)
    y = _layernorm_affine(e, gamma_ref[...], beta_ref[...])

    # TODO(synk): nn.Dropout omitted — identity in eval/inference mode.
    o_ref[0, :, :] = y


# ---------------------------------------------------------------------------
# Wrapper
# ---------------------------------------------------------------------------

def _pick_seq_tile(S, cap=512):
    """Largest tile <= cap that divides S and is a multiple of 8 (or full S)."""
    if S <= cap:
        return S
    for t in range(cap, 7, -8):
        if S % t == 0:
            return t
    return S   # fall back to a single full-length tile


def embeddings_forward(x, seg, tok_table, pos_table, seg_table, gamma, beta,
                       *, table_in_vmem=None, seq_tile_cap=512):
    B, S = x.shape
    V, D = tok_table.shape
    NSEG = seg_table.shape[0]

    if table_in_vmem is None:
        # Keep the table VMEM-resident only when the (double-buffered) block plus
        # tiles comfortably fits the 32 MiB scoped default (safe on v7x too).
        table_in_vmem = (V * D * 4) <= (8 << 20)

    ts = _pick_seq_tile(S, seq_tile_cap)
    n_s = S // ts
    assert n_s * ts == S

    pos_slice = pos_table[:S]                        # pos = arange(S) -> first S rows
    seg3 = seg.astype(jnp.int32).reshape(B, S, 1)    # ids broadcast over D in-kernel
    gamma2 = gamma.reshape(1, D)
    beta2 = beta.reshape(1, D)
    x32 = x.astype(jnp.int32)

    # Grid: sequence tiles outer, batch inner -> pos block index constant across
    # the batch sweep (stays resident), and the cross-step token prefetch never
    # crosses the (core-splittable) sequence axis.
    grid = (n_s, B)

    seg_spec = pl.BlockSpec((1, ts, 1), lambda s, b, ids: (b, s, 0))
    pos_spec = pl.BlockSpec((ts, D), lambda s, b, ids: (s, 0))
    segtab_spec = pl.BlockSpec((NSEG, D), lambda s, b, ids: (0, 0))
    gamma_spec = pl.BlockSpec((1, D), lambda s, b, ids: (0, 0))
    beta_spec = pl.BlockSpec((1, D), lambda s, b, ids: (0, 0))
    out_spec = pl.BlockSpec((1, ts, D), lambda s, b, ids: (b, s, 0))

    if table_in_vmem:
        kernel = embeddings_kernel_vmem
        tok_spec = pl.BlockSpec((V, D), lambda s, b, ids: (0, 0))   # resident block
        scratch = [pltpu.VMEM((ts, D), jnp.float32)]
        dims = ("parallel", "parallel")
    else:
        kernel = embeddings_kernel_hbm
        tok_spec = pl.BlockSpec(memory_space=pl.ANY)                # table stays in HBM
        scratch = [pltpu.VMEM((2, ts, D), jnp.float32),             # double-buffered rows
                   pltpu.SemaphoreType.DMA((2,))]
        # Batch axis must stay sequential per core for the cross-step prefetch.
        dims = ("parallel", "arbitrary")

    return pl.pallas_call(
        kernel,
        out_shape=jax.ShapeDtypeStruct((B, S, D), jnp.float32),
        grid_spec=pltpu.PrefetchScalarGridSpec(
            num_scalar_prefetch=1,                   # token ids -> SMEM
            grid=grid,
            in_specs=[seg_spec, tok_spec, pos_spec, segtab_spec, gamma_spec, beta_spec],
            out_specs=out_spec,
            scratch_shapes=scratch),
        compiler_params=pltpu.CompilerParams(dimension_semantics=dims),
    )(x32, seg3, tok_table, pos_slice, seg_table, gamma2, beta2)


def embeddings_reference(x, seg, tok_table, pos_table, seg_table, gamma, beta):
    """Plain-JAX reference matching the PyTorch module (eval mode)."""
    S = x.shape[1]
    pos = jnp.arange(S, dtype=jnp.int32)[None, :]
    e = tok_table[x] + pos_table[pos] + seg_table[seg]
    u = jnp.mean(e, axis=-1, keepdims=True)
    v = jnp.mean((e - u) ** 2, axis=-1, keepdims=True)
    xn = (e - u) / jnp.sqrt(v + 1e-12)
    return gamma * xn + beta


if __name__ == "__main__":
    # Small config: vocab_size=512, dim=128 (lane-dense), max_len=64, n_segments=2
    B, S, D = 2, 16, 128
    V, MAX_LEN, NSEG = 512, 64, 2

    key = jax.random.PRNGKey(0)
    k1, k2, k3, k4, k5, k6, k7 = jax.random.split(key, 7)

    tok_table = jax.random.normal(k1, (V, D), dtype=jnp.float32) * 0.02
    pos_table = jax.random.normal(k2, (MAX_LEN, D), dtype=jnp.float32) * 0.02
    seg_table = jax.random.normal(k3, (NSEG, D), dtype=jnp.float32) * 0.02
    gamma = 1.0 + 0.1 * jax.random.normal(k6, (D,), dtype=jnp.float32)
    beta = 0.1 * jax.random.normal(k7, (D,), dtype=jnp.float32)

    x = jax.random.randint(k4, (B, S), 0, V, dtype=jnp.int32)
    seg = jax.random.randint(k5, (B, S), 0, NSEG, dtype=jnp.int32)

    ref = embeddings_reference(x, seg, tok_table, pos_table, seg_table, gamma, beta)

    # Path A: HBM-gather + cross-step double buffering (force small tiles so the
    # multi-tile / multi-step pipeline is actually exercised: grid = (2, 2)).
    out_hbm = embeddings_forward(x, seg, tok_table, pos_table, seg_table, gamma, beta,
                                 table_in_vmem=False, seq_tile_cap=8)
    out_hbm = jax.block_until_ready(out_hbm)
    assert out_hbm.shape == (B, S, D)
    assert jnp.allclose(out_hbm, ref, atol=1e-4, rtol=1e-4), "HBM-gather path mismatch"

    # Path A again at the default (single sequence tile) configuration.
    out_hbm2 = embeddings_forward(x, seg, tok_table, pos_table, seg_table, gamma, beta,
                                  table_in_vmem=False)
    out_hbm2 = jax.block_until_ready(out_hbm2)
    assert jnp.allclose(out_hbm2, ref, atol=1e-4, rtol=1e-4), "HBM-gather (default) mismatch"

    # Path B: VMEM-resident token table (auto-selected here since the table is tiny).
    out_vmem = embeddings_forward(x, seg, tok_table, pos_table, seg_table, gamma, beta)
    out_vmem = jax.block_until_ready(out_vmem)
    assert out_vmem.shape == (B, S, D)
    assert jnp.allclose(out_vmem, ref, atol=1e-4, rtol=1e-4), "VMEM-table path mismatch"

    print("KERNEL_OK")
</pallas_src>

<mosaic_0001>
module attributes {stable_mosaic.version = 11 : i64} {
  func.func @embeddings_kernel_hbm(%arg0: i32, %arg1: i32, %arg2: memref<2x16xi32, #tpu.memory_space<smem>>, %arg3: memref<1x8x1xi32, #tpu.memory_space<vmem>>, %arg4: memref<512x128xf32, #tpu.memory_space<any>>, %arg5: memref<8x128xf32, #tpu.memory_space<vmem>>, %arg6: memref<2x128xf32, #tpu.memory_space<vmem>>, %arg7: memref<1x128xf32, #tpu.memory_space<vmem>>, %arg8: memref<1x128xf32, #tpu.memory_space<vmem>>, %arg9: memref<1x8x128xf32, #tpu.memory_space<vmem>>, %arg10: memref<2x8x128xf32, #tpu.memory_space<vmem>>, %arg11: memref<2x!tpu.dma_semaphore, #tpu.memory_space<semaphore_mem>>) attributes {dimension_semantics = [#tpu.dimension_semantics<parallel>, #tpu.dimension_semantics<arbitrary>], iteration_bounds = array<i64: 2, 2>, scalar_prefetch = 1 : i64, scratch_operands = 2 : i64, tpu.core_type = #tpu.core_type<tc>, window_params = [{transform_indices = @transform_0, window_bounds = array<i64: 1, 8, 1>}, {}, {transform_indices = @transform_2, window_bounds = array<i64: 8, 128>}, {pipeline_mode = #tpu.pipeline_mode<synchronous>, transform_indices = @transform_3, window_bounds = array<i64: 2, 128>}, {pipeline_mode = #tpu.pipeline_mode<synchronous>, transform_indices = @transform_4, window_bounds = array<i64: 1, 128>}, {pipeline_mode = #tpu.pipeline_mode<synchronous>, transform_indices = @transform_5, window_bounds = array<i64: 1, 128>}, {transform_indices = @transform_6, window_bounds = array<i64: 1, 8, 128>}]} {
    %c2_i32 = arith.constant 2 : i32
    %c0_i32 = arith.constant 0 : i32
    %0 = arith.cmpi eq, %c2_i32, %c0_i32 : i32
    %c1_i32 = arith.constant 1 : i32
    %1 = arith.select %0, %c1_i32, %c2_i32 : i32
    %2 = arith.remsi %arg1, %1 : i32
    %c0_i32_0 = arith.constant 0 : i32
    %3 = arith.cmpi ne, %2, %c0_i32_0 : i32
    %c0_i32_1 = arith.constant 0 : i32
    %4 = arith.cmpi slt, %2, %c0_i32_1 : i32
    %c0_i32_2 = arith.constant 0 : i32
    %5 = arith.cmpi slt, %1, %c0_i32_2 : i32
    %6 = arith.xori %4, %5 : i1
    %7 = arith.andi %6, %3 : i1
    %8 = arith.addi %2, %1 : i32
    %9 = arith.select %7, %8, %2 : i32
    %c0_i32_3 = arith.constant 0 : i32
    %10 = arith.cmpi eq, %arg1, %c0_i32_3 : i32
    %11 = arith.extui %10 : i1 to i32
    %c0_i32_4 = arith.constant 0 : i32
    %12 = arith.cmpi ne, %11, %c0_i32_4 : i32
    scf.if %12 {
      %c0_i32_34 = arith.constant 0 : i32
      %c8_i32 = arith.constant 8 : i32
      %70 = arith.muli %arg0, %c8_i32 : i32
      %71 = arith.addi %70, %c0_i32_34 : i32
      %c0_35 = arith.constant 0 : index
      %72 = arith.index_cast %71 : i32 to index
      %73 = memref.load %arg2[%c0_35, %72] : memref<2x16xi32, #tpu.memory_space<smem>>
      %c0_i32_36 = arith.constant 0 : i32
      %c0_i32_37 = arith.constant 0 : i32
      %c0_i32_38 = arith.constant 0 : i32
      %74 = tpu.memref_slice %arg4[%73, %c0_i32_38] : memref<512x128xf32, #tpu.memory_space<any>> -> memref<1x128xf32, #tpu.memory_space<any>>
      %c0_i32_39 = arith.constant 0 : i32
      %75 = tpu.memref_slice %arg10[%c0_i32_36, %c0_i32_34, %c0_i32_39] : memref<2x8x128xf32, #tpu.memory_space<vmem>> -> memref<1x1x128xf32, #tpu.memory_space<vmem>>
      %76 = tpu.memref_squeeze %75 : memref<1x1x128xf32, #tpu.memory_space<vmem>> -> memref<1x128xf32, #tpu.memory_space<vmem>>
      %77 = tpu.memref_slice %arg11[%c0_i32_37] : memref<2x!tpu.dma_semaphore, #tpu.memory_space<semaphore_mem>> -> memref<1x!tpu.dma_semaphore, #tpu.memory_space<semaphore_mem>>
      %78 = tpu.memref_squeeze %77 : memref<1x!tpu.dma_semaphore, #tpu.memory_space<semaphore_mem>> -> memref<!tpu.dma_semaphore, #tpu.memory_space<semaphore_mem>>
      tpu.enqueue_dma source(%74 : memref<1x128xf32, #tpu.memory_space<any>>) target(%76 : memref<1x128xf32, #tpu.memory_space<vmem>>) target_semaphore(%78 : memref<!tpu.dma_semaphore, #tpu.memory_space<semaphore_mem>>)
      %c1_i32_40 = arith.constant 1 : i32
      %c8_i32_41 = arith.constant 8 : i32
      %79 = arith.muli %arg0, %c8_i32_41 : i32
      %80 = arith.addi %79, %c1_i32_40 : i32
      %c0_42 = arith.constant 0 : index
      %81 = arith.index_cast %80 : i32 to index
      %82 = memref.load %arg2[%c0_42, %81] : memref<2x16xi32, #tpu.memory_space<smem>>
      %c0_i32_43 = arith.constant 0 : i32
      %c0_i32_44 = arith.constant 0 : i32
      %c0_i32_45 = arith.constant 0 : i32
      %83 = tpu.memref_slice %arg4[%82, %c0_i32_45] : memref<512x128xf32, #tpu.memory_space<any>> -> memref<1x128xf32, #tpu.memory_space<any>>
      %c0_i32_46 = arith.constant 0 : i32
      %84 = tpu.memref_slice %arg10[%c0_i32_43, %c1_i32_40, %c0_i32_46] : memref<2x8x128xf32, #tpu.memory_space<vmem>> -> memref<1x1x128xf32, #tpu.memory_space<vmem>>
      %85 = tpu.memref_squeeze %84 : memref<1x1x128xf32, #tpu.memory_space<vmem>> -> memref<1x128xf32, #tpu.memory_space<vmem>>
      %86 = tpu.memref_slice %arg11[%c0_i32_44] : memref<2x!tpu.dma_semaphore, #tpu.memory_space<semaphore_mem>> -> memref<1x!tpu.dma_semaphore, #tpu.memory_space<semaphore_mem>>
      %87 = tpu.memref_squeeze %86 : memref<1x!tpu.dma_semaphore, #tpu.memory_space<semaphore_mem>> -> memref<!tpu.dma_semaphore, #tpu.memory_space<semaphore_mem>>
      tpu.enqueue_dma source(%83 : memref<1x128xf32, #tpu.memory_space<any>>) target(%85 : memref<1x128xf32, #tpu.memory_space<vmem>>) target_semaphore(%87 : memref<!tpu.dma_semaphore, #tpu.memory_space<semaphore_mem>>)
      %c2_i32_47 = arith.constant 2 : i32
      %c8_i32_48 = arith.constant 8 : i32
      %88 = arith.muli %arg0, %c8_i32_48 : i32
      %89 = arith.addi %88, %c2_i32_47 : i32
      %c0_49 = arith.constant 0 : index
      %90 = arith.index_cast %89 : i32 to index
      %91 = memref.load %arg2[%c0_49, %90] : memref<2x16xi32, #tpu.memory_space<smem>>
      %c0_i32_50 = arith.constant 0 : i32
      %c0_i32_51 = arith.constant 0 : i32
      %c0_i32_52 = arith.constant 0 : i32
      %92 = tpu.memref_slice %arg4[%91, %c0_i32_52] : memref<512x128xf32, #tpu.memory_space<any>> -> memref<1x128xf32, #tpu.memory_space<any>>
      %c0_i32_53 = arith.constant 0 : i32
      %93 = tpu.memref_slice %arg10[%c0_i32_50, %c2_i32_47, %c0_i32_53] : memref<2x8x128xf32, #tpu.memory_space<vmem>> -> memref<1x1x128xf32, #tpu.memory_space<vmem>>
      %94 = tpu.memref_squeeze %93 : memref<1x1x128xf32, #tpu.memory_space<vmem>> -> memref<1x128xf32, #tpu.memory_space<vmem>>
      %95 = tpu.memref_slice %arg11[%c0_i32_51] : memref<2x!tpu.dma_semaphore, #tpu.memory_space<semaphore_mem>> -> memref<1x!tpu.dma_semaphore, #tpu.memory_space<semaphore_mem>>
      %96 = tpu.memref_squeeze %95 : memref<1x!tpu.dma_semaphore, #tpu.memory_space<semaphore_mem>> -> memref<!tpu.dma_semaphore, #tpu.memory_space<semaphore_mem>>
      tpu.enqueue_dma source(%92 : memref<1x128xf32, #tpu.memory_space<any>>) target(%94 : memref<1x128xf32, #tpu.memory_space<vmem>>) target_semaphore(%96 : memref<!tpu.dma_semaphore, #tpu.memory_space<semaphore_mem>>)
      %c3_i32 = arith.constant 3 : i32
      %c8_i32_54 = arith.constant 8 : i32
      %97 = arith.muli %arg0, %c8_i32_54 : i32
      %98 = arith.addi %97, %c3_i32 : i32
      %c0_55 = arith.constant 0 : index
      %99 = arith.index_cast %98 : i32 to index
      %100 = memref.load %arg2[%c0_55, %99] : memref<2x16xi32, #tpu.memory_space<smem>>
      %c0_i32_56 = arith.constant 0 : i32
      %c0_i32_57 = arith.constant 0 : i32
      %c0_i32_58 = arith.constant 0 : i32
      %101 = tpu.memref_slice %arg4[%100, %c0_i32_58] : memref<512x128xf32, #tpu.memory_space<any>> -> memref<1x128xf32, #tpu.memory_space<any>>
      %c0_i32_59 = arith.constant 0 : i32
      %102 = tpu.memref_slice %arg10[%c0_i32_56, %c3_i32, %c0_i32_59] : memref<2x8x128xf32, #tpu.memory_space<vmem>> -> memref<1x1x128xf32, #tpu.memory_space<vmem>>
      %103 = tpu.memref_squeeze %102 : memref<1x1x128xf32, #tpu.memory_space<vmem>> -> memref<1x128xf32, #tpu.memory_space<vmem>>
      %104 = tpu.memref_slice %arg11[%c0_i32_57] : memref<2x!tpu.dma_semaphore, #tpu.memory_space<semaphore_mem>> -> memref<1x!tpu.dma_semaphore, #tpu.memory_space<semaphore_mem>>
      %105 = tpu.memref_squeeze %104 : memref<1x!tpu.dma_semaphore, #tpu.memory_space<semaphore_mem>> -> memref<!tpu.dma_semaphore, #tpu.memory_space<semaphore_mem>>
      tpu.enqueue_dma source(%101 : memref<1x128xf32, #tpu.memory_space<any>>) target(%103 : memref<1x128xf32, #tpu.memory_space<vmem>>) target_semaphore(%105 : memref<!tpu.dma_semaphore, #tpu.memory_space<semaphore_mem>>)
      %c4_i32 = arith.constant 4 : i32
      %c8_i32_60 = arith.constant 8 : i32
      %106 = arith.muli %arg0, %c8_i32_60 : i32
      %107 = arith.addi %106, %c4_i32 : i32
      %c0_61 = arith.constant 0 : index
      %108 = arith.index_cast %107 : i32 to index
      %109 = memref.load %arg2[%c0_61, %108] : memref<2x16xi32, #tpu.memory_space<smem>>
      %c0_i32_62 = arith.constant 0 : i32
      %c0_i32_63 = arith.constant 0 : i32
      %c0_i32_64 = arith.constant 0 : i32
      %110 = tpu.memref_slice %arg4[%109, %c0_i32_64] : memref<512x128xf32, #tpu.memory_space<any>> -> memref<1x128xf32, #tpu.memory_space<any>>
      %c0_i32_65 = arith.constant 0 : i32
      %111 = tpu.memref_slice %arg10[%c0_i32_62, %c4_i32, %c0_i32_65] : memref<2x8x128xf32, #tpu.memory_space<vmem>> -> memref<1x1x128xf32, #tpu.memory_space<vmem>>
      %112 = tpu.memref_squeeze %111 : memref<1x1x128xf32, #tpu.memory_space<vmem>> -> memref<1x128xf32, #tpu.memory_space<vmem>>
      %113 = tpu.memref_slice %arg11[%c0_i32_63] : memref<2x!tpu.dma_semaphore, #tpu.memory_space<semaphore_mem>> -> memref<1x!tpu.dma_semaphore, #tpu.memory_space<semaphore_mem>>
      %114 = tpu.memref_squeeze %113 : memref<1x!tpu.dma_semaphore, #tpu.memory_space<semaphore_mem>> -> memref<!tpu.dma_semaphore, #tpu.memory_space<semaphore_mem>>
      tpu.enqueue_dma source(%110 : memref<1x128xf32, #tpu.memory_space<any>>) target(%112 : memref<1x128xf32, #tpu.memory_space<vmem>>) target_semaphore(%114 : memref<!tpu.dma_semaphore, #tpu.memory_space<semaphore_mem>>)
      %c5_i32 = arith.constant 5 : i32
      %c8_i32_66 = arith.constant 8 : i32
      %115 = arith.muli %arg0, %c8_i32_66 : i32
      %116 = arith.addi %115, %c5_i32 : i32
      %c0_67 = arith.constant 0 : index
      %117 = arith.index_cast %116 : i32 to index
      %118 = memref.load %arg2[%c0_67, %117] : memref<2x16xi32, #tpu.memory_space<smem>>
      %c0_i32_68 = arith.constant 0 : i32
      %c0_i32_69 = arith.constant 0 : i32
      %c0_i32_70 = arith.constant 0 : i32
      %119 = tpu.memref_slice %arg4[%118, %c0_i32_70] : memref<512x128xf32, #tpu.memory_space<any>> -> memref<1x128xf32, #tpu.memory_space<any>>
      %c0_i32_71 = arith.constant 0 : i32
      %120 = tpu.memref_slice %arg10[%c0_i32_68, %c5_i32, %c0_i32_71] : memref<2x8x128xf32, #tpu.memory_space<vmem>> -> memref<1x1x128xf32, #tpu.memory_space<vmem>>
      %121 = tpu.memref_squeeze %120 : memref<1x1x128xf32, #tpu.memory_space<vmem>> -> memref<1x128xf32, #tpu.memory_space<vmem>>
      %122 = tpu.memref_slice %arg11[%c0_i32_69] : memref<2x!tpu.dma_semaphore, #tpu.memory_space<semaphore_mem>> -> memref<1x!tpu.dma_semaphore, #tpu.memory_space<semaphore_mem>>
      %123 = tpu.memref_squeeze %122 : memref<1x!tpu.dma_semaphore, #tpu.memory_space<semaphore_mem>> -> memref<!tpu.dma_semaphore, #tpu.memory_space<semaphore_mem>>
      tpu.enqueue_dma source(%119 : memref<1x128xf32, #tpu.memory_space<any>>) target(%121 : memref<1x128xf32, #tpu.memory_space<vmem>>) target_semaphore(%123 : memref<!tpu.dma_semaphore, #tpu.memory_space<semaphore_mem>>)
      %c6_i32 = arith.constant 6 : i32
      %c8_i32_72 = arith.constant 8 : i32
      %124 = arith.muli %arg0, %c8_i32_72 : i32
      %125 = arith.addi %124, %c6_i32 : i32
      %c0_73 = arith.constant 0 : index
      %126 = arith.index_cast %125 : i32 to index
      %127 = memref.load %arg2[%c0_73, %126] : memref<2x16xi32, #tpu.memory_space<smem>>
      %c0_i32_74 = arith.constant 0 : i32
      %c0_i32_75 = arith.constant 0 : i32
      %c0_i32_76 = arith.constant 0 : i32
      %128 = tpu.memref_slice %arg4[%127, %c0_i32_76] : memref<512x128xf32, #tpu.memory_space<any>> -> memref<1x128xf32, #tpu.memory_space<any>>
      %c0_i32_77 = arith.constant 0 : i32
      %129 = tpu.memref_slice %arg10[%c0_i32_74, %c6_i32, %c0_i32_77] : memref<2x8x128xf32, #tpu.memory_space<vmem>> -> memref<1x1x128xf32, #tpu.memory_space<vmem>>
      %130 = tpu.memref_squeeze %129 : memref<1x1x128xf32, #tpu.memory_space<vmem>> -> memref<1x128xf32, #tpu.memory_space<vmem>>
      %131 = tpu.memref_slice %arg11[%c0_i32_75] : memref<2x!tpu.dma_semaphore, #tpu.memory_space<semaphore_mem>> -> memref<1x!tpu.dma_semaphore, #tpu.memory_space<semaphore_mem>>
      %132 = tpu.memref_squeeze %131 : memref<1x!tpu.dma_semaphore, #tpu.memory_space<semaphore_mem>> -> memref<!tpu.dma_semaphore, #tpu.memory_space<semaphore_mem>>
      tpu.enqueue_dma source(%128 : memref<1x128xf32, #tpu.memory_space<any>>) target(%130 : memref<1x128xf32, #tpu.memory_space<vmem>>) target_semaphore(%132 : memref<!tpu.dma_semaphore, #tpu.memory_space<semaphore_mem>>)
      %c7_i32 = arith.constant 7 : i32
      %c8_i32_78 = arith.constant 8 : i32
      %133 = arith.muli %arg0, %c8_i32_78 : i32
      %134 = arith.addi %133, %c7_i32 : i32
      %c0_79 = arith.constant 0 : index
      %135 = arith.index_cast %134 : i32 to index
      %136 = memref.load %arg2[%c0_79, %135] : memref<2x16xi32, #tpu.memory_space<smem>>
      %c0_i32_80 = arith.constant 0 : i32
      %c0_i32_81 = arith.constant 0 : i32
      %c0_i32_82 = arith.constant 0 : i32
      %137 = tpu.memref_slice %arg4[%136, %c0_i32_82] : memref<512x128xf32, #tpu.memory_space<any>> -> memref<1x128xf32, #tpu.memory_space<any>>
      %c0_i32_83 = arith.constant 0 : i32
      %138 = tpu.memref_slice %arg10[%c0_i32_80, %c7_i32, %c0_i32_83] : memref<2x8x128xf32, #tpu.memory_space<vmem>> -> memref<1x1x128xf32, #tpu.memory_space<vmem>>
      %139 = tpu.memref_squeeze %138 : memref<1x1x128xf32, #tpu.memory_space<vmem>> -> memref<1x128xf32, #tpu.memory_space<vmem>>
      %140 = tpu.memref_slice %arg11[%c0_i32_81] : memref<2x!tpu.dma_semaphore, #tpu.memory_space<semaphore_mem>> -> memref<1x!tpu.dma_semaphore, #tpu.memory_space<semaphore_mem>>
      %141 = tpu.memref_squeeze %140 : memref<1x!tpu.dma_semaphore, #tpu.memory_space<semaphore_mem>> -> memref<!tpu.dma_semaphore, #tpu.memory_space<semaphore_mem>>
      tpu.enqueue_dma source(%137 : memref<1x128xf32, #tpu.memory_space<any>>) target(%139 : memref<1x128xf32, #tpu.memory_space<vmem>>) target_semaphore(%141 : memref<!tpu.dma_semaphore, #tpu.memory_space<semaphore_mem>>)
      %c8_i32_84 = arith.constant 8 : i32
    } else {
    }
    %c1_i32_5 = arith.constant 1 : i32
    %13 = arith.addi %arg1, %c1_i32_5 : i32
    %c2_i32_6 = arith.constant 2 : i32
    %14 = arith.cmpi slt, %13, %c2_i32_6 : i32
    %15 = arith.extui %14 : i1 to i32
    %c0_i32_7 = arith.constant 0 : i32
    %16 = arith.cmpi ne, %15, %c0_i32_7 : i32
    scf.if %16 {
      %c1_i32_34 = arith.constant 1 : i32
      %70 = arith.addi %arg1, %c1_i32_34 : i32
      %c1_i32_35 = arith.constant 1 : i32
      %71 = arith.subi %c1_i32_35, %9 : i32
      %c0_i32_36 = arith.constant 0 : i32
      %c8_i32 = arith.constant 8 : i32
      %72 = arith.muli %arg0, %c8_i32 : i32
      %73 = arith.addi %72, %c0_i32_36 : i32
      %74 = arith.index_cast %70 : i32 to index
      %75 = arith.index_cast %73 : i32 to index
      %76 = memref.load %arg2[%74, %75] : memref<2x16xi32, #tpu.memory_space<smem>>
      %c0_i32_37 = arith.constant 0 : i32
      %77 = tpu.memref_slice %arg4[%76, %c0_i32_37] : memref<512x128xf32, #tpu.memory_space<any>> -> memref<1x128xf32, #tpu.memory_space<any>>
      %c0_i32_38 = arith.constant 0 : i32
      %78 = tpu.memref_slice %arg10[%71, %c0_i32_36, %c0_i32_38] : memref<2x8x128xf32, #tpu.memory_space<vmem>> -> memref<1x1x128xf32, #tpu.memory_space<vmem>>
      %79 = tpu.memref_squeeze %78 : memref<1x1x128xf32, #tpu.memory_space<vmem>> -> memref<1x128xf32, #tpu.memory_space<vmem>>
      %80 = tpu.memref_slice %arg11[%71] : memref<2x!tpu.dma_semaphore, #tpu.memory_space<semaphore_mem>> -> memref<1x!tpu.dma_semaphore, #tpu.memory_space<semaphore_mem>>
      %81 = tpu.memref_squeeze %80 : memref<1x!tpu.dma_semaphore, #tpu.memory_space<semaphore_mem>> -> memref<!tpu.dma_semaphore, #tpu.memory_space<semaphore_mem>>
      tpu.enqueue_dma source(%77 : memref<1x128xf32, #tpu.memory_space<any>>) target(%79 : memref<1x128xf32, #tpu.memory_space<vmem>>) target_semaphore(%81 : memref<!tpu.dma_semaphore, #tpu.memory_space<semaphore_mem>>)
      %c1_i32_39 = arith.constant 1 : i32
      %c8_i32_40 = arith.constant 8 : i32
      %82 = arith.muli %arg0, %c8_i32_40 : i32
      %83 = arith.addi %82, %c1_i32_39 : i32
      %84 = arith.index_cast %70 : i32 to index
      %85 = arith.index_cast %83 : i32 to index
      %86 = memref.load %arg2[%84, %85] : memref<2x16xi32, #tpu.memory_space<smem>>
      %c0_i32_41 = arith.constant 0 : i32
      %87 = tpu.memref_slice %arg4[%86, %c0_i32_41] : memref<512x128xf32, #tpu.memory_space<any>> -> memref<1x128xf32, #tpu.memory_space<any>>
      %c0_i32_42 = arith.constant 0 : i32
      %88 = tpu.memref_slice %arg10[%71, %c1_i32_39, %c0_i32_42] : memref<2x8x128xf32, #tpu.memory_space<vmem>> -> memref<1x1x128xf32, #tpu.memory_space<vmem>>
      %89 = tpu.memref_squeeze %88 : memref<1x1x128xf32, #tpu.memory_space<vmem>> -> memref<1x128xf32, #tpu.memory_space<vmem>>
      %90 = tpu.memref_slice %arg11[%71] : memref<2x!tpu.dma_semaphore, #tpu.memory_space<semaphore_mem>> -> memref<1x!tpu.dma_semaphore, #tpu.memory_space<semaphore_mem>>
      %91 = tpu.memref_squeeze %90 : memref<1x!tpu.dma_semaphore, #tpu.memory_space<semaphore_mem>> -> memref<!tpu.dma_semaphore, #tpu.memory_space<semaphore_mem>>
      tpu.enqueue_dma source(%87 : memref<1x128xf32, #tpu.memory_space<any>>) target(%89 : memref<1x128xf32, #tpu.memory_space<vmem>>) target_semaphore(%91 : memref<!tpu.dma_semaphore, #tpu.memory_space<semaphore_mem>>)
      %c2_i32_43 = arith.constant 2 : i32
      %c8_i32_44 = arith.constant 8 : i32
      %92 = arith.muli %arg0, %c8_i32_44 : i32
      %93 = arith.addi %92, %c2_i32_43 : i32
      %94 = arith.index_cast %70 : i32 to index
      %95 = arith.index_cast %93 : i32 to index
      %96 = memref.load %arg2[%94, %95] : memref<2x16xi32, #tpu.memory_space<smem>>
      %c0_i32_45 = arith.constant 0 : i32
      %97 = tpu.memref_slice %arg4[%96, %c0_i32_45] : memref<512x128xf32, #tpu.memory_space<any>> -> memref<1x128xf32, #tpu.memory_space<any>>
      %c0_i32_46 = arith.constant 0 : i32
      %98 = tpu.memref_slice %arg10[%71, %c2_i32_43, %c0_i32_46] : memref<2x8x128xf32, #tpu.memory_space<vmem>> -> memref<1x1x128xf32, #tpu.memory_space<vmem>>
      %99 = tpu.memref_squeeze %98 : memref<1x1x128xf32, #tpu.memory_space<vmem>> -> memref<1x128xf32, #tpu.memory_space<vmem>>
      %100 = tpu.memref_slice %arg11[%71] : memref<2x!tpu.dma_semaphore, #tpu.memory_space<semaphore_mem>> -> memref<1x!tpu.dma_semaphore, #tpu.memory_space<semaphore_mem>>
      %101 = tpu.memref_squeeze %100 : memref<1x!tpu.dma_semaphore, #tpu.memory_space<semaphore_mem>> -> memref<!tpu.dma_semaphore, #tpu.memory_space<semaphore_mem>>
      tpu.enqueue_dma source(%97 : memref<1x128xf32, #tpu.memory_space<any>>) target(%99 : memref<1x128xf32, #tpu.memory_space<vmem>>) target_semaphore(%101 : memref<!tpu.dma_semaphore, #tpu.memory_space<semaphore_mem>>)
      %c3_i32 = arith.constant 3 : i32
      %c8_i32_47 = arith.constant 8 : i32
      %102 = arith.muli %arg0, %c8_i32_47 : i32
      %103 = arith.addi %102, %c3_i32 : i32
      %104 = arith.index_cast %70 : i32 to index
      %105 = arith.index_cast %103 : i32 to index
      %106 = memref.load %arg2[%104, %105] : memref<2x16xi32, #tpu.memory_space<smem>>
      %c0_i32_48 = arith.constant 0 : i32
      %107 = tpu.memref_slice %arg4[%106, %c0_i32_48] : memref<512x128xf32, #tpu.memory_space<any>> -> memref<1x128xf32, #tpu.memory_space<any>>
      %c0_i32_49 = arith.constant 0 : i32
      %108 = tpu.memref_slice %arg10[%71, %c3_i32, %c0_i32_49] : memref<2x8x128xf32, #tpu.memory_space<vmem>> -> memref<1x1x128xf32, #tpu.memory_space<vmem>>
      %109 = tpu.memref_squeeze %108 : memref<1x1x128xf32, #tpu.memory_space<vmem>> -> memref<1x128xf32, #tpu.memory_space<vmem>>
      %110 = tpu.memref_slice %arg11[%71] : memref<2x!tpu.dma_semaphore, #tpu.memory_space<semaphore_mem>> -> memref<1x!tpu.dma_semaphore, #tpu.memory_space<semaphore_mem>>
      %111 = tpu.memref_squeeze %110 : memref<1x!tpu.dma_semaphore, #tpu.memory_space<semaphore_mem>> -> memref<!tpu.dma_semaphore, #tpu.memory_space<semaphore_mem>>
      tpu.enqueue_dma source(%107 : memref<1x128xf32, #tpu.memory_space<any>>) target(%109 : memref<1x128xf32, #tpu.memory_space<vmem>>) target_semaphore(%111 : memref<!tpu.dma_semaphore, #tpu.memory_space<semaphore_mem>>)
      %c4_i32 = arith.constant 4 : i32
      %c8_i32_50 = arith.constant 8 : i32
      %112 = arith.muli %arg0, %c8_i32_50 : i32
      %113 = arith.addi %112, %c4_i32 : i32
      %114 = arith.index_cast %70 : i32 to index
      %115 = arith.index_cast %113 : i32 to index
      %116 = memref.load %arg2[%114, %115] : memref<2x16xi32, #tpu.memory_space<smem>>
      %c0_i32_51 = arith.constant 0 : i32
      %117 = tpu.memref_slice %arg4[%116, %c0_i32_51] : memref<512x128xf32, #tpu.memory_space<any>> -> memref<1x128xf32, #tpu.memory_space<any>>
      %c0_i32_52 = arith.constant 0 : i32
      %118 = tpu.memref_slice %arg10[%71, %c4_i32, %c0_i32_52] : memref<2x8x128xf32, #tpu.memory_space<vmem>> -> memref<1x1x128xf32, #tpu.memory_space<vmem>>
      %119 = tpu.memref_squeeze %118 : memref<1x1x128xf32, #tpu.memory_space<vmem>> -> memref<1x128xf32, #tpu.memory_space<vmem>>
      %120 = tpu.memref_slice %arg11[%71] : memref<2x!tpu.dma_semaphore, #tpu.memory_space<semaphore_mem>> -> memref<1x!tpu.dma_semaphore, #tpu.memory_space<semaphore_mem>>
      %121 = tpu.memref_squeeze %120 : memref<1x!tpu.dma_semaphore, #tpu.memory_space<semaphore_mem>> -> memref<!tpu.dma_semaphore, #tpu.memory_space<semaphore_mem>>
      tpu.enqueue_dma source(%117 : memref<1x128xf32, #tpu.memory_space<any>>) target(%119 : memref<1x128xf32, #tpu.memory_space<vmem>>) target_semaphore(%121 : memref<!tpu.dma_semaphore, #tpu.memory_space<semaphore_mem>>)
      %c5_i32 = arith.constant 5 : i32
      %c8_i32_53 = arith.constant 8 : i32
      %122 = arith.muli %arg0, %c8_i32_53 : i32
      %123 = arith.addi %122, %c5_i32 : i32
      %124 = arith.index_cast %70 : i32 to index
      %125 = arith.index_cast %123 : i32 to index
      %126 = memref.load %arg2[%124, %125] : memref<2x16xi32, #tpu.memory_space<smem>>
      %c0_i32_54 = arith.constant 0 : i32
      %127 = tpu.memref_slice %arg4[%126, %c0_i32_54] : memref<512x128xf32, #tpu.memory_space<any>> -> memref<1x128xf32, #tpu.memory_space<any>>
      %c0_i32_55 = arith.constant 0 : i32
      %128 = tpu.memref_slice %arg10[%71, %c5_i32, %c0_i32_55] : memref<2x8x128xf32, #tpu.memory_space<vmem>> -> memref<1x1x128xf32, #tpu.memory_space<vmem>>
      %129 = tpu.memref_squeeze %128 : memref<1x1x128xf32, #tpu.memory_space<vmem>> -> memref<1x128xf32, #tpu.memory_space<vmem>>
      %130 = tpu.memref_slice %arg11[%71] : memref<2x!tpu.dma_semaphore, #tpu.memory_space<semaphore_mem>> -> memref<1x!tpu.dma_semaphore, #tpu.memory_space<semaphore_mem>>
      %131 = tpu.memref_squeeze %130 : memref<1x!tpu.dma_semaphore, #tpu.memory_space<semaphore_mem>> -> memref<!tpu.dma_semaphore, #tpu.memory_space<semaphore_mem>>
      tpu.enqueue_dma source(%127 : memref<1x128xf32, #tpu.memory_space<any>>) target(%129 : memref<1x128xf32, #tpu.memory_space<vmem>>) target_semaphore(%131 : memref<!tpu.dma_semaphore, #tpu.memory_space<semaphore_mem>>)
      %c6_i32 = arith.constant 6 : i32
      %c8_i32_56 = arith.constant 8 : i32
      %132 = arith.muli %arg0, %c8_i32_56 : i32
      %133 = arith.addi %132, %c6_i32 : i32
      %134 = arith.index_cast %70 : i32 to index
      %135 = arith.index_cast %133 : i32 to index
      %136 = memref.load %arg2[%134, %135] : memref<2x16xi32, #tpu.memory_space<smem>>
      %c0_i32_57 = arith.constant 0 : i32
      %137 = tpu.memref_slice %arg4[%136, %c0_i32_57] : memref<512x128xf32, #tpu.memory_space<any>> -> memref<1x128xf32, #tpu.memory_space<any>>
      %c0_i32_58 = arith.constant 0 : i32
      %138 = tpu.memref_slice %arg10[%71, %c6_i32, %c0_i32_58] : memref<2x8x128xf32, #tpu.memory_space<vmem>> -> memref<1x1x128xf32, #tpu.memory_space<vmem>>
      %139 = tpu.memref_squeeze %138 : memref<1x1x128xf32, #tpu.memory_space<vmem>> -> memref<1x128xf32, #tpu.memory_space<vmem>>
      %140 = tpu.memref_slice %arg11[%71] : memref<2x!tpu.dma_semaphore, #tpu.memory_space<semaphore_mem>> -> memref<1x!tpu.dma_semaphore, #tpu.memory_space<semaphore_mem>>
      %141 = tpu.memref_squeeze %140 : memref<1x!tpu.dma_semaphore, #tpu.memory_space<semaphore_mem>> -> memref<!tpu.dma_semaphore, #tpu.memory_space<semaphore_mem>>
      tpu.enqueue_dma source(%137 : memref<1x128xf32, #tpu.memory_space<any>>) target(%139 : memref<1x128xf32, #tpu.memory_space<vmem>>) target_semaphore(%141 : memref<!tpu.dma_semaphore, #tpu.memory_space<semaphore_mem>>)
      %c7_i32 = arith.constant 7 : i32
      %c8_i32_59 = arith.constant 8 : i32
      %142 = arith.muli %arg0, %c8_i32_59 : i32
      %143 = arith.addi %142, %c7_i32 : i32
      %144 = arith.index_cast %70 : i32 to index
      %145 = arith.index_cast %143 : i32 to index
      %146 = memref.load %arg2[%144, %145] : memref<2x16xi32, #tpu.memory_space<smem>>
      %c0_i32_60 = arith.constant 0 : i32
      %147 = tpu.memref_slice %arg4[%146, %c0_i32_60] : memref<512x128xf32, #tpu.memory_space<any>> -> memref<1x128xf32, #tpu.memory_space<any>>
      %c0_i32_61 = arith.constant 0 : i32
      %148 = tpu.memref_slice %arg10[%71, %c7_i32, %c0_i32_61] : memref<2x8x128xf32, #tpu.memory_space<vmem>> -> memref<1x1x128xf32, #tpu.memory_space<vmem>>
      %149 = tpu.memref_squeeze %148 : memref<1x1x128xf32, #tpu.memory_space<vmem>> -> memref<1x128xf32, #tpu.memory_space<vmem>>
      %150 = tpu.memref_slice %arg11[%71] : memref<2x!tpu.dma_semaphore, #tpu.memory_space<semaphore_mem>> -> memref<1x!tpu.dma_semaphore, #tpu.memory_space<semaphore_mem>>
      %151 = tpu.memref_squeeze %150 : memref<1x!tpu.dma_semaphore, #tpu.memory_space<semaphore_mem>> -> memref<!tpu.dma_semaphore, #tpu.memory_space<semaphore_mem>>
      tpu.enqueue_dma source(%147 : memref<1x128xf32, #tpu.memory_space<any>>) target(%149 : memref<1x128xf32, #tpu.memory_space<vmem>>) target_semaphore(%151 : memref<!tpu.dma_semaphore, #tpu.memory_space<semaphore_mem>>)
      %c8_i32_62 = arith.constant 8 : i32
    } else {
    }
    %c0 = arith.constant 0 : index
    %c0_8 = arith.constant 0 : index
    %c0_9 = arith.constant 0 : index
    %17 = vector.load %arg3[%c0, %c0_8, %c0_9] : memref<1x8x1xi32, #tpu.memory_space<vmem>>, vector<1x8x1xi32>
    %18 = vector.shape_cast %17 : vector<1x8x1xi32> to vector<8x1xi32>
    %c0_10 = arith.constant 0 : index
    %c0_11 = arith.constant 0 : index
    %19 = vector.load %arg5[%c0_10, %c0_11] : memref<8x128xf32, #tpu.memory_space<vmem>>, vector<8x128xf32>
    %c0_12 = arith.constant 0 : index
    %c0_13 = arith.constant 0 : index
    %20 = vector.load %arg6[%c0_12, %c0_13] : memref<2x128xf32, #tpu.memory_space<vmem>>, vector<1x128xf32>
    %21 = vector.shape_cast %20 : vector<1x128xf32> to vector<1x128xf32>
    %22 = vector.broadcast %21 : vector<1x128xf32> to vector<8x128xf32>
    %c1_i32_14 = arith.constant 1 : i32
    %23 = vector.broadcast %c1_i32_14 : i32 to vector<8x1xi32>
    %24 = arith.cmpi eq, %18, %23 : vector<8x1xi32>
    %c1 = arith.constant 1 : index
    %c0_15 = arith.constant 0 : index
    %25 = vector.load %arg6[%c1, %c0_15] : memref<2x128xf32, #tpu.memory_space<vmem>>, vector<1x128xf32>
    %26 = vector.shape_cast %24 : vector<8x1xi1> to vector<8x1xi1>
    %27 = vector.broadcast %26 : vector<8x1xi1> to vector<8x128xi1>
    %28 = vector.shape_cast %25 : vector<1x128xf32> to vector<1x128xf32>
    %29 = vector.broadcast %28 : vector<1x128xf32> to vector<8x128xf32>
    %30 = arith.select %27, %29, %22 : vector<8x128xi1>, vector<8x128xf32>
    %31 = arith.addf %19, %30 : vector<8x128xf32>
    %c0_i32_16 = arith.constant 0 : i32
    %c0_i32_17 = arith.constant 0 : i32
    %32 = tpu.memref_slice %arg4[%c0_i32_16, %c0_i32_17] : memref<512x128xf32, #tpu.memory_space<any>> -> memref<8x128xf32, #tpu.memory_space<any>>
    %c0_i32_18 = arith.constant 0 : i32
    %c0_i32_19 = arith.constant 0 : i32
    %33 = tpu.memref_slice %arg10[%9, %c0_i32_18, %c0_i32_19] : memref<2x8x128xf32, #tpu.memory_space<vmem>> -> memref<1x8x128xf32, #tpu.memory_space<vmem>>
    %34 = tpu.memref_squeeze %33 : memref<1x8x128xf32, #tpu.memory_space<vmem>> -> memref<8x128xf32, #tpu.memory_space<vmem>>
    %35 = tpu.memref_slice %arg11[%9] : memref<2x!tpu.dma_semaphore, #tpu.memory_space<semaphore_mem>> -> memref<1x!tpu.dma_semaphore, #tpu.memory_space<semaphore_mem>>
    %36 = tpu.memref_squeeze %35 : memref<1x!tpu.dma_semaphore, #tpu.memory_space<semaphore_mem>> -> memref<!tpu.dma_semaphore, #tpu.memory_space<semaphore_mem>>
    tpu.wait_dma2 semaphore(%36 : memref<!tpu.dma_semaphore, #tpu.memory_space<semaphore_mem>>) src(%32 : memref<8x128xf32, #tpu.memory_space<any>>) dst(%34 : memref<8x128xf32, #tpu.memory_space<vmem>>)
    %37 = arith.index_cast %9 : i32 to index
    %c0_20 = arith.constant 0 : index
    %c0_21 = arith.constant 0 : index
    %38 = vector.load %arg10[%37, %c0_20, %c0_21] : memref<2x8x128xf32, #tpu.memory_space<vmem>>, vector<1x8x128xf32>
    %39 = vector.shape_cast %38 : vector<1x8x128xf32> to vector<8x128xf32>
    %40 = arith.addf %39, %31 : vector<8x128xf32>
    %c0_22 = arith.constant 0 : index
    %c0_23 = arith.constant 0 : index
    %41 = vector.load %arg7[%c0_22, %c0_23] : memref<1x128xf32, #tpu.memory_space<vmem>>, vector<1x128xf32>
    %c0_24 = arith.constant 0 : index
    %c0_25 = arith.constant 0 : index
    %42 = vector.load %arg8[%c0_24, %c0_25] : memref<1x128xf32, #tpu.memory_space<vmem>>, vector<1x128xf32>
    %cst = arith.constant dense<0.000000e+00> : vector<8xf32>
    %43 = vector.multi_reduction <add>, %40, %cst [1] : vector<8x128xf32> to vector<8xf32>
    %44 = vector.shape_cast %43 : vector<8xf32> to vector<8x1xf32>
    %cst_26 = arith.constant 7.812500e-03 : f32
    %45 = vector.broadcast %cst_26 : f32 to vector<8x1xf32>
    %46 = arith.mulf %44, %45 : vector<8x1xf32>
    %47 = arith.mulf %40, %40 : vector<8x128xf32>
    %cst_27 = arith.constant dense<0.000000e+00> : vector<8xf32>
    %48 = vector.multi_reduction <add>, %47, %cst_27 [1] : vector<8x128xf32> to vector<8xf32>
    %49 = vector.shape_cast %48 : vector<8xf32> to vector<8x1xf32>
    %cst_28 = arith.constant 7.812500e-03 : f32
    %50 = vector.broadcast %cst_28 : f32 to vector<8x1xf32>
    %51 = arith.mulf %49, %50 : vector<8x1xf32>
    %52 = arith.mulf %46, %46 : vector<8x1xf32>
    %53 = arith.subf %51, %52 : vector<8x1xf32>
    %cst_29 = arith.constant 0.000000e+00 : f32
    %54 = vector.broadcast %cst_29 : f32 to vector<8x1xf32>
    %55 = arith.maximumf %53, %54 : vector<8x1xf32>
    %56 = vector.broadcast %46 : vector<8x1xf32> to vector<8x128xf32>
    %57 = arith.subf %40, %56 : vector<8x128xf32>
    %cst_30 = arith.constant 9.99999996E-13 : f32
    %58 = vector.broadcast %cst_30 : f32 to vector<8x1xf32>
    %59 = arith.addf %55, %58 : vector<8x1xf32>
    %60 = math.rsqrt %59 : vector<8x1xf32>
    %61 = vector.broadcast %60 : vector<8x1xf32> to vector<8x128xf32>
    %62 = arith.mulf %57, %61 : vector<8x128xf32>
    %63 = vector.broadcast %41 : vector<1x128xf32> to vector<8x128xf32>
    %64 = arith.mulf %63, %62 : vector<8x128xf32>
    %65 = vector.broadcast %42 : vector<1x128xf32> to vector<8x128xf32>
    %66 = arith.addf %64, %65 : vector<8x128xf32>
    %c0_31 = arith.constant 0 : index
    %c0_32 = arith.constant 0 : index
    %c0_33 = arith.constant 0 : index
    %67 = vector.load %arg9[%c0_31, %c0_32, %c0_33] : memref<1x8x128xf32, #tpu.memory_space<vmem>>, vector<1x8x128xf32>
    %68 = vector.shape_cast %67 : vector<1x8x128xf32> to vector<8x128xf32>
    %69 = vector.shape_cast %66 : vector<8x128xf32> to vector<1x8x128xf32>
    tpu.vector_store %arg9[%c0_31, %c0_32, %c0_33], %69 {strides = array<i32>} : memref<1x8x128xf32, #tpu.memory_space<vmem>>, vector<1x8x128xf32>,
    return
  }
  func.func @transform_0(%arg0: i32, %arg1: i32, %arg2: memref<2x16xi32, #tpu.memory_space<smem>>) -> (i32, i32, i32) {
    %c0_i32 = arith.constant 0 : i32
    %c0_i32_0 = arith.constant 0 : i32
    return %arg1, %arg0, %c0_i32 : i32, i32, i32
  }
  func.func @transform_2(%arg0: i32, %arg1: i32, %arg2: memref<2x16xi32, #tpu.memory_space<smem>>) -> (i32, i32) {
    %c0_i32 = arith.constant 0 : i32
    %c0_i32_0 = arith.constant 0 : i32
    return %arg0, %c0_i32 : i32, i32
  }
  func.func @transform_3(%arg0: i32, %arg1: i32, %arg2: memref<2x16xi32, #tpu.memory_space<smem>>) -> (i32, i32) {
    %c0_i32 = arith.constant 0 : i32
    %c0_i32_0 = arith.constant 0 : i32
    %c0_i32_1 = arith.constant 0 : i32
    return %c0_i32, %c0_i32_0 : i32, i32
  }
  func.func @transform_4(%arg0: i32, %arg1: i32, %arg2: memref<2x16xi32, #tpu.memory_space<smem>>) -> (i32, i32) {
    %c0_i32 = arith.constant 0 : i32
    %c0_i32_0 = arith.constant 0 : i32
    %c0_i32_1 = arith.constant 0 : i32
    return %c0_i32, %c0_i32_0 : i32, i32
  }
  func.func @transform_5(%arg0: i32, %arg1: i32, %arg2: memref<2x16xi32, #tpu.memory_space<smem>>) -> (i32, i32) {
    %c0_i32 = arith.constant 0 : i32
    %c0_i32_0 = arith.constant 0 : i32
    %c0_i32_1 = arith.constant 0 : i32
    return %c0_i32, %c0_i32_0 : i32, i32
  }
  func.func @transform_6(%arg0: i32, %arg1: i32, %arg2: memref<2x16xi32, #tpu.memory_space<smem>>) -> (i32, i32, i32) {
    %c0_i32 = arith.constant 0 : i32
    %c0_i32_0 = arith.constant 0 : i32
    return %arg1, %arg0, %c0_i32 : i32, i32, i32
  }
}

</mosaic_0001>

<bundles_post_ra>
// kernel: tpu_custom_call.1
= control target key start
LH: loop header
LB: loop body
LE: loop exit
PB: predicated region body
PF: predicated region fallthrough
CT: control target
= control target key end

     0   :  { %s2371_s0 = inlined_call_operand.vmem [shape: s32[2,16], index: 0, kind: input, shape index: {}]   ;;  %s2372_s1 = inlined_call_operand.vmem [shape: s32[2,16,1], index: 1, kind: input, shape index: {}]   ;;  %s2373_s2 = inlined_call_operand.hbm [shape: f32[512,128], index: 2, kind: input, shape index: {}]   ;;  %s2374_s3 = inlined_call_operand.vmem [shape: f32[16,128], index: 3, kind: input, shape index: {}]   ;;  %s2375_s4 = inlined_call_operand.vmem [shape: f32[2,128], index: 4, kind: input, shape index: {}]   ;;  %s2376_s5 = inlined_call_operand.vmem [shape: f32[1,128], index: 5, kind: input, shape index: {}]   ;;  %s2377_s6 = inlined_call_operand.vmem [shape: f32[1,128], index: 6, kind: input, shape index: {}]   ;;  %s2378_s7 = inlined_call_operand.hbm [shape: f32[2,16,128], index: 7, kind: output, shape index: {}]  }
   0x1   :  { %2400 = sst [smem:[#allocation76_spill]] %s2372_s1  ;;  %s12_s26 = sshll.u32 %s2371_s0, 4  ;;  %s13_s26 = int_to_ptr.vmem [resolvable:$true] %s12_s26 }
   0x2   :  { %2401 = sst [smem:[#allocation77_spill]] %s2374_s3  ;;  %s1048_s27 = scalar_lea.vmem %s13_s26, 32 }
   0x3   :  { %2402 = sst [smem:[#allocation78_spill]] %s2375_s4  ;;  %p1049_p0 = scmp.ne.s32.totalorder %s13_s26, %s1048_s27 }
   0x4   :  { %2403 = sst [smem:[#allocation79_spill]] %s2376_s5  ;;  %p1053_p1 = scmp.lt.s32.totalorder %s13_s26, %s13_s26 }
   0x5   :  { %2404 = sst [smem:[#allocation80_spill]] %s2377_s6  ;;  %p1054_p2 = scmp.lt.s32.totalorder %s1048_s27, %s1048_s27 }
   0x6   :  { %2405 = sst [smem:[#allocation81_spill]] %s2378_s7 }
   0x7   :  { %p1055_p3 = por %p1054_p2, %p1053_p1 }
   0x9   :  { %p1056_p4 = pnand %p1055_p3, %p1049_p0 }
   0xb   :  { %1059 = shalt.err (!%p1056_p4)  }
   0xc   :  { %s1608_s28 = smov [#allocation5]  }
   0xd   :  { %15 = dma.vmem_to_smem %s13_s26, 32, %s1608_s28, [#allocation4] }
   0xe   :  { %1568 = dma.done.wait [#allocation4], 32 }
   0xf   :  { %1569 = vsyncadd [#allocation4], 4294967264 }
  0x10   :  { %17 = sfence }
  0x11   :  { %18 = vsyncpa [#allocation7], 0 }
  0x12   :  { %20 = vsyncpa [#allocation7 + $0x1], 0  ;;  %s1662_s29 = smov 0   ;;  %s1664_s30 = smov 0  }
  0x13   :  { %s1666_s0 = smov 0   ;;  %s1668_s8 = smov 0  }
  0x14   :  { %s1670_s9 = smov 0   ;;  %s1672_s10 = smov 0  }
  0x15   :  { %s1674_s11 = smov 0   ;;  %s1676_s12 = smov 0  }
  0x16 LB: > { %2406 = sst [smem:[#allocation61_spill]] %s1578_s29  ;;  %s852_s13 = sadd.s32 4294967295, %s1606_s12   ;;  %s1606_s12 = sphi %s1676_s12, %s26_s12   ;;  %s1602_s11 = sphi %s1674_s11, %s2455_s11   ;;  %s1598_s10 = sphi %s1672_s10, %s2454_s10   ;;  %s1594_s9 = sphi %s1670_s9, %s2453_s9   ;;  %s1590_s8 = sphi %s1668_s8, %s2452_s8   ;;  %s1586_s0 = sphi %s1666_s0, %s2451_s0   ;;  %s1582_s30 = sphi %s1664_s30, %s2450_s30   ;;  %s1578_s29 = sphi %s1662_s29, %s2449_s29  }
  0x17   : > { %2407 = sst [smem:[#allocation62_spill]] %s1582_s30  ;;  %s853_s14 = sadd.s32 4294967294, %s1606_s12  }
  0x18   : > { %2408 = sst [smem:[#allocation63_spill]] %s1586_s0  ;;  %s35_s15 = sadd.s32 1, %s1598_s10 }
  0x19   : > { %2409 = sst [smem:[#allocation64_spill]] %s1590_s8  ;;  %p36_p5 = scmp.ge.s32.totalorder %s35_s15, 2 }
  0x1a   : > { %2410 = sst [smem:[#allocation65_spill]] %s1594_s9  ;;  %s38_s16 = sadd.s32 1, %s1602_s11 }
  0x1b   : > { %2411 = sst [smem:[#allocation66_spill]] %s1598_s10  ;;  %p174_p6 = scmp.ne.s32.totalorder %s1586_s0, %s1582_s30 }
  0x1c   : > { %2412 = sst [smem:[#allocation67_spill]] %s1602_s11  ;;  %p175_p7 = scmp.eq.s32.totalorder %s852_s13, 3 }
  0x1d   : > { %2413 = sst [smem:[#allocation68_spill]] %s1606_s12  ;;  %s2457_s15 = smov (%p36_p5, %s35_s15), 0 }
  0x1e   : > { %2414 = sst [smem:[#allocation69_spill]] %s2457_s15  ;;  %s2459_s16 = smov (!%p36_p5, %s38_s16), %s1602_s11 }
  0x1f   : > { %s159_s17 = ssub.s32 %s1598_s10, %s2457_s15  ;;  %p1713_p8 = por %p175_p7, %p174_p6 }
  0x20   : > { %p40_p9 = scmp.ge.s32.totalorder %s2459_s16, 2  ;;  %p180_p10 = scmp.ne.s32.totalorder %s1582_s30, %s1578_s29 }
  0x21   : > { %s2415_s18 = scalar_select %p1713_p8, 1, 0 }
  0x22   : > { %p181_p11 = scmp.eq.s32.totalorder %s853_s14, 3  ;;  %p856_p12 = scmp.ge.s32.totalorder %s1606_s12, 1 }
  0x23   : > { %2416 = sst [smem:[#allocation70_spill]] %s2415_s18  ;;  %s2461_s16 = smov (%p40_p9, %s2459_s16), 0 }
  0x24   : > { %2417 = sst [smem:[#allocation71_spill]] %s2461_s16  ;;  %p1722_p13 = por %p181_p11, %p180_p10 }
  0x25   : > { %p226_p0 = scmp.lt.s32.totalorder %s1606_s12, 5  ;;  %s160_s20 = ssub.s32 %s1602_s11, %s2461_s16 }
  0x26   : > { %s2418_s19 = scalar_select %p1722_p13, 1, 0 }
  0x27   : > { %s164_s21 = sadd.s32 1, %s1586_s0  ;;  %s161_s22 = sor.u32 %s160_s20, %s159_s17 }
  0x28   : > { %2419 = sst [smem:[#allocation72_spill]] %s2418_s19  ;;  %p227_p1 = pnand %p856_p12, %p226_p0 }
  0x29   : > { %p162_p2 = scmp.eq.s32.totalorder %s161_s22, 0 }
  0x2a   : > { %230 = sbr.rel (%p227_p1) target bundleno = 704 (0x2c0), region = 40 }
  0x2b   : > { %s1731_s23 = scalar_select %p162_p2, %s1586_s0, %s164_s21  }
  0x2d   : > { %2420 = sst [smem:[#allocation73_spill]] %s1731_s23 }
  0x31   : > { %p261_p3 = scmp.lt.s32.totalorder %s1590_s8, 1  ;;  %p263_p4 = scmp.lt.s32.totalorder %s1594_s9, 1  ;;  %v1609_v0 = vmov 0  }
  0x32   : > { %1045 = vset.pattern.permute.xlu0 %v1609_v0  ;;  %s2380_s24 = sand.u32 1, %s1582_s30   ;;  %p968_p5 = scmp.eq.s32.totalorder %s1590_s8, 0 }
  0x33   : > { %s262_s25 = scalar_select %p261_p3, %s1590_s8, 1 }
  0x34   : > { %s1738_s26 = scalar_select %p263_p4, %s1594_s9, 1 }
  0x35   : > { %s858_s27 = sshll.u32 %s262_s25, 1  ;;  %s1742_s28 = sshll.u32 %s2380_s24, 3 }
  0x36   : > { %2421 = sst [smem:[#allocation74_spill]] %s1742_s28  ;;  %s266_s13 = sadd.s32 %s858_s27, %s1738_s26 }
  0x37   : > { %s859_s14 = sshll.u32 %s266_s13, 3  ;;  %s2422_s1 = sld [smem:[#allocation76_spill]] }
  0x38   : > { %s1750_s22 = sshll.u32 %s1594_s9, 3  ;;  %s1610_s17 = smov [#allocation2]  }
  0x39   : > { %s913_s16 = scalar_select %p968_p5, [#allocation5], [#allocation42] }
  0x3a   : > { %s914_s25 = scalar_select %p968_p5, %s1750_s22, 0 }
  0x3b   : > { %s1758_s13 = sadd.s32 1, %s1750_s22 }
  0x3c   : > { %s290_s27 = sld [smem:[%s913_s16 + %s914_s25]]  ;;  %s1772_s16 = sadd.s32 2, %s1750_s22 }
  0x3d   : > { %s268_s21 = scalar_lea.vmem %s2422_s1, %s859_s14  ;;  %s300_s14 = sshll.u32 %s1610_s17, 4  ;;  %s1765_s14 = int_to_ptr.vmem [resolvable:$true] %s300_s14 }
  0x3e   : > { %v615_v1 = vld [vmem:[%s268_s21] sm:$0xff]  ;;  %s916_s20 = scalar_select %p968_p5, [#allocation5], [#allocation43] }
  0x3f   : > { %vm622_vm0 = vcmp.eq.s32.totalorder %v615_v1, 1  ;;  %s917_s24 = scalar_select %p968_p5, %s1758_s13, 0 }
  0x40   : > { %v624_v2 = vsel %vm622_vm0, 1, %v1609_v0  ;;  %s1611_s21 = smov [#allocation2 + $0x1]  }
  0x41   : > { %626 = vperm.xlu0 %1045, %v624_v2   ;;  %s316_s1 = sshll.u32 %s1611_s21, 4  ;;  %s1767_s15 = sld [smem:[%s916_s20 + %s917_s24]]  ;;  %s1769_s1 = int_to_ptr.vmem [resolvable:$true] %s316_s1 }
  0x42   : > { %s866_s11 = sshll.u32 %s290_s27, 4  ;;  %s1782_s21 = scalar_lea.hbm %s2373_s2, 8192 }
  0x43   : > { %s292_s23 = scalar_lea.hbm %s2373_s2, %s866_s11 }
  0x44   : > { %s1060_s17 = scalar_lea.hbm %s292_s23, 16  ;;  %p1065_p10 = scmp.lt.u32.totalorder %s292_s23, %s2373_s2 }
  0x45   : > { %p1061_p6 = scmp.ne.s32.totalorder %s292_s23, %s1060_s17  ;;  %p1066_p11 = scmp.lt.u32.totalorder %s1782_s21, %s1060_s17 }
  0x46   : > { %p1068_p0 = scmp.lt.u32.totalorder %s1060_s17, %s292_s23 }
  0x47   : > { %p1062_p7 = pnand %p1061_p6, %p968_p5  ;;  %p1067_p12 = por %p1066_p11, %p1065_p10 }
  0x49   : > { %p1063_p9 = pneg %p1062_p7  ;;  %p1069_p1 = por %p1068_p0, %p1067_p12 }
  0x4b   : > { %p1070_p2 = pnand %p1069_p1, %p1063_p9 }
  0x4d   : > { %1073 = shalt.err (!%p1070_p2)  }
  0x4e   : > { %s1074_s10 = scalar_lea.vmem %s1765_s14, 16  ;;  %s1793_s0 = scalar_lea.vmem %s1765_s14, 256 }
  0x4f   : > { %p1075_p3 = scmp.ne.s32.totalorder %s1765_s14, %s1074_s10  ;;  %p1081_p7 = scmp.lt.s32.totalorder %s1765_s14, %s1765_s14 }
  0x50   : > { %p1082_p10 = scmp.lt.s32.totalorder %s1793_s0, %s1074_s10 }
  0x51   : > { %p1076_p4 = pnand %p1075_p3, %p968_p5 }
  0x52   : > { %p1083_p11 = por %p1082_p10, %p1081_p7 }
  0x53   : > { %p1077_p6 = pneg %p1076_p4 }
  0x55   : > { %p1084_p12 = pnand %p1083_p11, %p1077_p6 }
  0x57   : > { %1087 = shalt.err (!%p1084_p12)  }
  0x58   : > { %915 = dma.hbm_to_vmem [thread:$0]  (%p968_p5), %s292_s23, 16, %s1765_s14, [#allocation3] }
  0x59   : > { %s919_s11 = scalar_select %p968_p5, [#allocation5], [#allocation44] }
  0x5a   : > { %s920_s19 = scalar_select %p968_p5, %s1772_s16, 0 }
  0x5b   : > { %s867_s27 = sshll.u32 %s1767_s15, 4  ;;  %s1612_s25 = smov [#allocation2 + $0x2]  }
  0x5c   : > { %s332_s17 = sshll.u32 %s1612_s25, 4  ;;  %s307_s10 = scalar_lea.hbm %s2373_s2, %s867_s27  ;;  %s1828_s17 = int_to_ptr.vmem [resolvable:$true] %s332_s17 }
  0x5d   : > { %s1810_s29 = sld [smem:[%s919_s11 + %s920_s19]]  ;;  %s1088_s12 = scalar_lea.hbm %s307_s10, 16 }
  0x5e   : > { %p1089_p9 = scmp.ne.s32.totalorder %s307_s10, %s1088_s12  ;;  %p1093_p2 = scmp.lt.u32.totalorder %s307_s10, %s2373_s2 }
  0x5f   : > { %p1094_p3 = scmp.lt.u32.totalorder %s1782_s21, %s1088_s12  ;;  %p1096_p6 = scmp.lt.u32.totalorder %s1088_s12, %s307_s10 }
  0x60   : > { %p1090_p0 = pnand %p1089_p9, %p968_p5 }
  0x61   : > { %p1095_p4 = por %p1094_p3, %p1093_p2 }
  0x62   : > { %p1091_p1 = pneg %p1090_p0 }
  0x63   : > { %p1097_p7 = por %p1096_p6, %p1095_p4 }
  0x65   : > { %p1098_p10 = pnand %p1097_p7, %p1091_p1 }
  0x67   : > { %1101 = shalt.err (!%p1098_p10)  }
  0x68   : > { %s1102_s15 = scalar_lea.vmem %s1769_s1, 16  ;;  %p1109_p0 = scmp.lt.s32.totalorder %s1769_s1, %s1765_s14 }
  0x69   : > { %p1103_p11 = scmp.ne.s32.totalorder %s1769_s1, %s1102_s15  ;;  %p1110_p13 = scmp.lt.s32.totalorder %s1793_s0, %s1102_s15 }
  0x6b   : > { %p1104_p12 = pnand %p1103_p11, %p968_p5  ;;  %p1111_p8 = por %p1110_p13, %p1109_p0 }
  0x6d   : > { %p1105_p9 = pneg %p1104_p12 }
  0x6f   : > { %p1112_p2 = pnand %p1111_p8, %p1105_p9 }
  0x71   : > { %1115 = shalt.err (!%p1112_p2)  }
  0x72   : > { %918 = dma.hbm_to_vmem [thread:$0]  (%p968_p5), %s307_s10, 16, %s1769_s1, [#allocation3] }
  0x73   : > { %s1831_s7 = sadd.s32 3, %s1750_s22  ;;  %s868_s19 = sshll.u32 %s1810_s29, 4 }
  0x74   : > { %s922_s12 = scalar_select %p968_p5, [#allocation5], [#allocation45] }
  0x75   : > { %s923_s11 = scalar_select %p968_p5, %s1831_s7, 0 }
  0x76   : > { %s1613_s27 = smov [#allocation2 + $0x3]   ;;  %s323_s23 = scalar_lea.hbm %s2373_s2, %s868_s19 }
  0x77   : > { %s348_s25 = sshll.u32 %s1613_s27, 4  ;;  %s1842_s15 = sld [smem:[%s922_s12 + %s923_s11]]  ;;  %s1860_s25 = int_to_ptr.vmem [resolvable:$true] %s348_s25 }
  0x78   : > { %s1116_s6 = scalar_lea.hbm %s323_s23, 16  ;;  %p1121_p3 = scmp.lt.u32.totalorder %s323_s23, %s2373_s2 }
  0x79   : > { %p1117_p8 = scmp.ne.s32.totalorder %s323_s23, %s1116_s6  ;;  %p1122_p4 = scmp.lt.u32.totalorder %s1782_s21, %s1116_s6 }
  0x7a   : > { %p1124_p7 = scmp.lt.u32.totalorder %s1116_s6, %s323_s23 }
  0x7b   : > { %p1118_p13 = pnand %p1117_p8, %p968_p5  ;;  %p1123_p6 = por %p1122_p4, %p1121_p3 }
  0x7d   : > { %p1119_p1 = pneg %p1118_p13  ;;  %p1125_p10 = por %p1124_p7, %p1123_p6 }
  0x7f   : > { %p1126_p11 = pnand %p1125_p10, %p1119_p1 }
  0x81   : > { %1129 = shalt.err (!%p1126_p11)  }
  0x82   : > { %s1130_s29 = scalar_lea.vmem %s1828_s17, 16  ;;  %p1137_p2 = scmp.lt.s32.totalorder %s1828_s17, %s1765_s14 }
  0x83   : > { %p1131_p12 = scmp.ne.s32.totalorder %s1828_s17, %s1130_s29  ;;  %p1138_p8 = scmp.lt.s32.totalorder %s1793_s0, %s1130_s29 }
  0x85   : > { %p1132_p9 = pnand %p1131_p12, %p968_p5  ;;  %p1139_p13 = por %p1138_p8, %p1137_p2 }
  0x87   : > { %p1133_p0 = pneg %p1132_p9 }
  0x89   : > { %p1140_p3 = pnand %p1139_p13, %p1133_p0 }
  0x8b   : > { %1143 = shalt.err (!%p1140_p3)  }
  0x8c   : > { %921 = dma.hbm_to_vmem [thread:$0]  (%p968_p5), %s323_s23, 16, %s1828_s17, [#allocation3] }
  0x8d   : > { %s1863_s6 = sadd.s32 4, %s1750_s22  ;;  %s869_s19 = sshll.u32 %s1842_s15, 4 }
  0x8e   : > { %s925_s12 = scalar_select %p968_p5, [#allocation5], [#allocation46] }
  0x8f   : > { %s926_s11 = scalar_select %p968_p5, %s1863_s6, 0 }
  0x90   : > { %s1614_s27 = smov [#allocation2 + $0x4]   ;;  %s339_s10 = scalar_lea.hbm %s2373_s2, %s869_s19 }
  0x91   : > { %s364_s24 = sshll.u32 %s1614_s27, 4  ;;  %s1874_s29 = sld [smem:[%s925_s12 + %s926_s11]]  ;;  %s1893_s24 = int_to_ptr.vmem [resolvable:$true] %s364_s24 }
  0x92   : > { %s1144_s5 = scalar_lea.hbm %s339_s10, 16  ;;  %p1149_p7 = scmp.lt.u32.totalorder %s339_s10, %s2373_s2 }
  0x93   : > { %p1145_p1 = scmp.ne.s32.totalorder %s339_s10, %s1144_s5  ;;  %p1150_p10 = scmp.lt.u32.totalorder %s1782_s21, %s1144_s5 }
  0x94   : > { %p1152_p12 = scmp.lt.u32.totalorder %s1144_s5, %s339_s10 }
  0x95   : > { %p1146_p4 = pnand %p1145_p1, %p968_p5  ;;  %p1151_p11 = por %p1150_p10, %p1149_p7 }
  0x97   : > { %p1147_p6 = pneg %p1146_p4  ;;  %p1153_p9 = por %p1152_p12, %p1151_p11 }
  0x99   : > { %p1154_p0 = pnand %p1153_p9, %p1147_p6 }
  0x9b   : > { %1157 = shalt.err (!%p1154_p0)  }
  0x9c   : > { %s1158_s15 = scalar_lea.vmem %s1860_s25, 16  ;;  %p1165_p3 = scmp.lt.s32.totalorder %s1860_s25, %s1765_s14 }
  0x9d   : > { %p1159_p2 = scmp.ne.s32.totalorder %s1860_s25, %s1158_s15  ;;  %p1166_p1 = scmp.lt.s32.totalorder %s1793_s0, %s1158_s15 }
  0x9f   : > { %p1160_p8 = pnand %p1159_p2, %p968_p5  ;;  %p1167_p4 = por %p1166_p1, %p1165_p3 }
  0xa1   : > { %p1161_p13 = pneg %p1160_p8 }
  0xa3   : > { %p1168_p7 = pnand %p1167_p4, %p1161_p13 }
  0xa5   : > { %1171 = shalt.err (!%p1168_p7)  }
  0xa6   : > { %924 = dma.hbm_to_vmem [thread:$0]  (%p968_p5), %s339_s10, 16, %s1860_s25, [#allocation3] }
  0xa7   : > { %s1896_s12 = sadd.s32 5, %s1750_s22  ;;  %s870_s27 = sshll.u32 %s1874_s29, 4 }
  0xa8   : > { %s928_s11 = scalar_select %p968_p5, [#allocation5], [#allocation47] }
  0xa9   : > { %s929_s19 = scalar_select %p968_p5, %s1896_s12, 0 }
  0xaa   : > { %s1615_s20 = smov [#allocation2 + $0x5]   ;;  %s355_s15 = scalar_lea.hbm %s2373_s2, %s870_s27 }
  0xab   : > { %s380_s1 = sshll.u32 %s1615_s20, 4  ;;  %s1907_s18 = sld [smem:[%s928_s11 + %s929_s19]]  ;;  %s1926_s1 = int_to_ptr.vmem [resolvable:$true] %s380_s1 }
  0xac   : > { %s1172_s25 = scalar_lea.hbm %s355_s15, 16  ;;  %p1177_p12 = scmp.lt.u32.totalorder %s355_s15, %s2373_s2 }
  0xad   : > { %p1173_p6 = scmp.ne.s32.totalorder %s355_s15, %s1172_s25  ;;  %p1178_p9 = scmp.lt.u32.totalorder %s1782_s21, %s1172_s25 }
  0xae   : > { %p1180_p2 = scmp.lt.u32.totalorder %s1172_s25, %s355_s15 }
  0xaf   : > { %p1174_p10 = pnand %p1173_p6, %p968_p5  ;;  %p1179_p0 = por %p1178_p9, %p1177_p12 }
  0xb1   : > { %p1175_p11 = pneg %p1174_p10  ;;  %p1181_p8 = por %p1180_p2, %p1179_p0 }
  0xb3   : > { %p1182_p13 = pnand %p1181_p8, %p1175_p11 }
  0xb5   : > { %1185 = shalt.err (!%p1182_p13)  }
  0xb6   : > { %s1186_s29 = scalar_lea.vmem %s1893_s24, 16  ;;  %p1193_p7 = scmp.lt.s32.totalorder %s1893_s24, %s1765_s14 }
  0xb7   : > { %p1187_p3 = scmp.ne.s32.totalorder %s1893_s24, %s1186_s29  ;;  %p1194_p6 = scmp.lt.s32.totalorder %s1793_s0, %s1186_s29 }
  0xb9   : > { %p1188_p1 = pnand %p1187_p3, %p968_p5  ;;  %p1195_p10 = por %p1194_p6, %p1193_p7 }
  0xbb   : > { %p1189_p4 = pneg %p1188_p1 }
  0xbd   : > { %p1196_p9 = pnand %p1195_p10, %p1189_p4 }
  0xbf   : > { %1199 = shalt.err (!%p1196_p9)  }
  0xc0   : > { %927 = dma.hbm_to_vmem [thread:$0]  (%p968_p5), %s355_s15, 16, %s1893_s24, [#allocation3] }
  0xc1   : > { %s1929_s11 = sadd.s32 6, %s1750_s22  ;;  %s871_s20 = sshll.u32 %s1907_s18, 4 }
  0xc2   : > { %s931_s19 = scalar_select %p968_p5, [#allocation5], [#allocation48] }
  0xc3   : > { %s932_s27 = scalar_select %p968_p5, %s1929_s11, 0 }
  0xc4   : > { %s1616_s17 = smov [#allocation2 + $0x6]   ;;  %s371_s29 = scalar_lea.hbm %s2373_s2, %s871_s20 }
  0xc5   : > { %s396_s23 = sshll.u32 %s1616_s17, 4  ;;  %s1940_s30 = sld [smem:[%s931_s19 + %s932_s27]]  ;;  %s1959_s23 = int_to_ptr.vmem [resolvable:$true] %s396_s23 }
  0xc6   : > { %s1200_s24 = scalar_lea.hbm %s371_s29, 16  ;;  %p1205_p2 = scmp.lt.u32.totalorder %s371_s29, %s2373_s2 }
  0xc7   : > { %p1201_p11 = scmp.ne.s32.totalorder %s371_s29, %s1200_s24  ;;  %p1206_p8 = scmp.lt.u32.totalorder %s1782_s21, %s1200_s24 }
  0xc8   : > { %p1208_p3 = scmp.lt.u32.totalorder %s1200_s24, %s371_s29 }
  0xc9   : > { %p1202_p12 = pnand %p1201_p11, %p968_p5  ;;  %p1207_p13 = por %p1206_p8, %p1205_p2 }
  0xcb   : > { %p1203_p0 = pneg %p1202_p12  ;;  %p1209_p1 = por %p1208_p3, %p1207_p13 }
  0xcd   : > { %p1210_p4 = pnand %p1209_p1, %p1203_p0 }
  0xcf   : > { %1213 = shalt.err (!%p1210_p4)  }
  0xd0   : > { %s1214_s18 = scalar_lea.vmem %s1926_s1, 16  ;;  %p1221_p9 = scmp.lt.s32.totalorder %s1926_s1, %s1765_s14 }
  0xd1   : > { %p1215_p7 = scmp.ne.s32.totalorder %s1926_s1, %s1214_s18  ;;  %p1222_p11 = scmp.lt.s32.totalorder %s1793_s0, %s1214_s18 }
  0xd3   : > { %p1216_p6 = pnand %p1215_p7, %p968_p5  ;;  %p1223_p12 = por %p1222_p11, %p1221_p9 }
  0xd5   : > { %p1217_p10 = pneg %p1216_p6 }
  0xd7   : > { %p1224_p2 = pnand %p1223_p12, %p1217_p10 }
  0xd9   : > { %1227 = shalt.err (!%p1224_p2)  }
  0xda   : > { %930 = dma.hbm_to_vmem [thread:$0]  (%p968_p5), %s371_s29, 16, %s1926_s1, [#allocation3] }
  0xdb   : > { %s1962_s19 = sadd.s32 7, %s1750_s22  ;;  %s872_s17 = sshll.u32 %s1940_s30, 4 }
  0xdc   : > { %s934_s27 = scalar_select %p968_p5, [#allocation5], [#allocation49] }
  0xdd   : > { %s935_s20 = scalar_select %p968_p5, %s1962_s19, 0 }
  0xde   : > { %s1617_s25 = smov [#allocation2 + $0x7]   ;;  %s387_s18 = scalar_lea.hbm %s2373_s2, %s872_s17 }
  0xdf   : > { %s412_s10 = sshll.u32 %s1617_s25, 4  ;;  %s1973_s9 = sld [smem:[%s934_s27 + %s935_s20]]  ;;  %s1992_s10 = int_to_ptr.vmem [resolvable:$true] %s412_s10 }
  0xe0   : > { %s1228_s1 = scalar_lea.hbm %s387_s18, 16  ;;  %p1233_p3 = scmp.lt.u32.totalorder %s387_s18, %s2373_s2 }
  0xe1   : > { %p1229_p0 = scmp.ne.s32.totalorder %s387_s18, %s1228_s1  ;;  %p1234_p1 = scmp.lt.u32.totalorder %s1782_s21, %s1228_s1 }
  0xe2   : > { %p1236_p7 = scmp.lt.u32.totalorder %s1228_s1, %s387_s18 }
  0xe3   : > { %p1230_p8 = pnand %p1229_p0, %p968_p5  ;;  %p1235_p4 = por %p1234_p1, %p1233_p3 }
  0xe5   : > { %p1231_p13 = pneg %p1230_p8  ;;  %p1237_p6 = por %p1236_p7, %p1235_p4 }
  0xe7   : > { %p1238_p10 = pnand %p1237_p6, %p1231_p13 }
  0xe9   : > { %1241 = shalt.err (!%p1238_p10)  }
  0xea   : > { %s1242_s30 = scalar_lea.vmem %s1959_s23, 16  ;;  %p1249_p2 = scmp.lt.s32.totalorder %s1959_s23, %s1765_s14 }
  0xeb   : > { %p1243_p9 = scmp.ne.s32.totalorder %s1959_s23, %s1242_s30  ;;  %p1250_p0 = scmp.lt.s32.totalorder %s1793_s0, %s1242_s30 }
  0xed   : > { %p1244_p11 = pnand %p1243_p9, %p968_p5  ;;  %p1251_p8 = por %p1250_p0, %p1249_p2 }
  0xef   : > { %p1245_p12 = pneg %p1244_p11 }
  0xf1   : > { %p1252_p1 = pnand %p1251_p8, %p1245_p12 }
  0xf3   : > { %1255 = shalt.err (!%p1252_p1)  }
  0xf4   : > { %933 = dma.hbm_to_vmem [thread:$0]  (%p968_p5), %s387_s18, 16, %s1959_s23, [#allocation3] }
  0xf5   : > { %s274_s27 = ssub.s32 0, %s1590_s8  ;;  %s2000_s17 = sadd.s32 1, %s1590_s8 }
  0xf6   : > { %s1997_s20 = smin.u32 %s1590_s8, %s274_s27  ;;  %s873_s24 = sshll.u32 %s1973_s9, 4 }
  0xf7   : > { %s276_s25 = sand.u32 1, %s1997_s20   ;;  %s403_s28 = scalar_lea.hbm %s2373_s2, %s873_s24 }
  0xf8   : > { %s277_s15 = ssub.s32 0, %s276_s25  ;;  %s1256_s23 = scalar_lea.hbm %s403_s28, 16 }
  0xf9   : > { %p1257_p3 = scmp.ne.s32.totalorder %s403_s28, %s1256_s23  ;;  %p1261_p6 = scmp.lt.u32.totalorder %s403_s28, %s2373_s2 }
  0xfa   : > { %p1262_p10 = scmp.lt.u32.totalorder %s1782_s21, %s1256_s23  ;;  %p1264_p11 = scmp.lt.u32.totalorder %s1256_s23, %s403_s28 }
  0xfb   : > { %p1258_p4 = pnand %p1257_p3, %p968_p5 }
  0xfc   : > { %p1263_p9 = por %p1262_p10, %p1261_p6 }
  0xfd   : > { %p1259_p7 = pneg %p1258_p4 }
  0xfe   : > { %p1265_p12 = por %p1264_p11, %p1263_p9 }
 0x100   : > { %p1266_p2 = pnand %p1265_p12, %p1259_p7 }
 0x102   : > { %1269 = shalt.err (!%p1266_p2)  }
 0x103   : > { %s1270_s9 = scalar_lea.vmem %s1992_s10, 16  ;;  %p1277_p3 = scmp.lt.s32.totalorder %s1992_s10, %s1765_s14 }
 0x104   : > { %p1271_p0 = scmp.ne.s32.totalorder %s1992_s10, %s1270_s9  ;;  %p1278_p4 = scmp.lt.s32.totalorder %s1793_s0, %s1270_s9 }
 0x106   : > { %p1272_p8 = pnand %p1271_p0, %p968_p5  ;;  %p1279_p13 = por %p1278_p4, %p1277_p3 }
 0x108   : > { %p1273_p1 = pneg %p1272_p8 }
 0x10a   : > { %p1280_p6 = pnand %p1279_p13, %p1273_p1 }
 0x10c   : > { %1283 = shalt.err (!%p1280_p6)  }
 0x10d   : > { %936 = dma.hbm_to_vmem [thread:$0]  (%p968_p5), %s403_s28, 16, %s1992_s10, [#allocation3] }
 0x10e   : > { %p2423_p7 = scmp.lt.s32.totalorder %s1590_s8, 0  ;;  %p969_p10 = scmp.lt.s32.totalorder %s2000_s17, 2 }
 0x10f   : > { %s423_s5 = sshra.s32 %s1750_s22, 7  ;;  %s428_s24 = sand.u32 127, %s1750_s22 }
 0x110   : > { %s2463_s15 = smov (!%p2423_p7, %s277_s15), %s276_s25  ;;  %s425_s20 = sadd.s32 %s423_s5, %s2000_s17 }
 0x111   : > { %p863_p9 = scmp.lt.s32.totalorder %s2463_s15, 0  ;;  %s283_s27 = sadd.s32 2, %s2463_s15 }
 0x112   : > { %s876_s29 = sshll.u32 %s425_s20, 7  ;;  %s2425_s30 = sshra.s32 %s1758_s13, 7 }
 0x113   : > { %s2465_s27 = smov (!%p863_p9, %s283_s27), %s2463_s15  ;;  %s450_s23 = sadd.s32 %s2425_s30, %s2000_s17 }
 0x114   : > { %2424 = sst [smem:[#allocation75_spill]] %s2465_s27  ;;  %s421_s18 = ssub.s32 1, %s2465_s27 }
 0x115   : > { %s429_s9 = sadd.s32 %s876_s29, %s428_s24  ;;  %s878_s10 = sshll.u32 %s421_s18, 3 }
 0x116   : > { %s938_s28 = scalar_select %p969_p10, [#allocation5], [#allocation50] }
 0x117   : > { %s2467_s9 = smov (!%p969_p10, %s429_s9), 0  ;;  %s879_s25 = sshll.u32 %s450_s23, 7 }
 0x118   : > { %s430_s1 = sld [smem:[%s938_s28 + %s2467_s9]]  ;;  %s2040_s5 = scalar_lea.vmem [#allocation2], %s878_s10 }
 0x119   : > { %s443_s22 = sshll.u32 %s2040_s5, 4  ;;  %s453_s20 = sand.u32 127, %s1758_s13  ;;  %s2045_s22 = int_to_ptr.vmem [resolvable:$true] %s443_s22 }
 0x11a   : > { %s770_s30 = scalar_lea.vmem %s2040_s5, 1 [#allocation2]  ;;  %s454_s8 = sadd.s32 %s879_s25, %s453_s20 }
 0x11b   : > { %s2050_s24 = scalar_select %p969_p10, [#allocation5], [#allocation51] }
 0x11c   : > { %s2055_s28 = sshll.u32 %s770_s30, 4  ;;  %s2057_s10 = scalar_lea.sflag [#allocation3], %s421_s18  ;;  %s2089_s28 = int_to_ptr.vmem [resolvable:$true] %s2055_s28 }
 0x11e   : > { %s877_s29 = sshll.u32 %s430_s1, 4 }
 0x11f   : > { %s432_s9 = scalar_lea.hbm %s2373_s2, %s877_s29 }
 0x120   : > { %s1284_s3 = scalar_lea.hbm %s432_s9, 16  ;;  %p1289_p12 = scmp.lt.u32.totalorder %s432_s9, %s2373_s2 }
 0x121   : > { %p1285_p5 = scmp.ne.s32.totalorder %s432_s9, %s1284_s3  ;;  %p1290_p2 = scmp.lt.u32.totalorder %s1782_s21, %s1284_s3 }
 0x122   : > { %p1292_p8 = scmp.lt.u32.totalorder %s1284_s3, %s432_s9 }
 0x123   : > { %p1286_p13 = pnand %p1285_p5, %p969_p10  ;;  %p1291_p0 = por %p1290_p2, %p1289_p12 }
 0x125   : > { %p1287_p11 = pneg %p1286_p13  ;;  %p1293_p1 = por %p1292_p8, %p1291_p0 }
 0x127   : > { %p1294_p3 = pnand %p1293_p1, %p1287_p11 }
 0x129   : > { %1297 = shalt.err (!%p1294_p3)  }
 0x12a   : > { %s1298_s4 = scalar_lea.vmem %s2045_s22, 16  ;;  %p1305_p9 = scmp.lt.s32.totalorder %s2045_s22, %s1765_s14 }
 0x12b   : > { %p1299_p4 = scmp.ne.s32.totalorder %s2045_s22, %s1298_s4  ;;  %p1306_p5 = scmp.lt.s32.totalorder %s1793_s0, %s1298_s4 }
 0x12d   : > { %p1300_p6 = pnand %p1299_p4, %p969_p10  ;;  %p1307_p13 = por %p1306_p5, %p1305_p9 }
 0x12f   : > { %p1301_p7 = pneg %p1300_p6 }
 0x131   : > { %p1308_p2 = pnand %p1307_p13, %p1301_p7 }
 0x133   : > { %1311 = shalt.err (!%p1308_p2)  }
 0x134   : > { %940 = dma.hbm_to_vmem [thread:$0]  (%p969_p10), %s432_s9, 16, %s2045_s22, %s2057_s10 }
 0x135   : > { %s2469_s8 = smov (!%p969_p10, %s454_s8), 0  ;;  %s2426_s3 = sshra.s32 %s1772_s16, 7 }
 0x136   : > { %s474_s1 = sadd.s32 %s2426_s3, %s2000_s17  ;;  %s477_s18 = sand.u32 127, %s1772_s16 }
 0x137   : > { %s455_s25 = sld [smem:[%s2050_s24 + %s2469_s8]]  ;;  %s882_s15 = sshll.u32 %s474_s1, 7 }
 0x138   : > { %s478_s20 = sadd.s32 %s882_s15, %s477_s18  ;;  %s775_s30 = scalar_lea.vmem %s2040_s5, 2 [#allocation2] }
 0x139   : > { %s944_s29 = scalar_select %p969_p10, [#allocation5], [#allocation52] }
 0x13a   : > { %s2471_s20 = smov (!%p969_p10, %s478_s20), 0  ;;  %s2427_s23 = sshra.s32 %s1831_s7, 7 }
 0x13b   : > { %s2094_s22 = sadd.s32 %s2427_s23, %s2000_s17  ;;  %s2096_s9 = sld [smem:[%s944_s29 + %s2471_s20]] }
 0x13c   : > { %s491_s13 = sshll.u32 %s775_s30, 4  ;;  %s885_s8 = sshll.u32 %s2094_s22, 7  ;;  %s492_s13 = int_to_ptr.vmem [resolvable:$true] %s491_s13 }
 0x13d   : > { %s880_s16 = sshll.u32 %s455_s25, 4  ;;  %s501_s1 = sand.u32 127, %s1831_s7 }
 0x13e   : > { %s457_s3 = scalar_lea.hbm %s2373_s2, %s880_s16 }
 0x13f   : > { %s1312_s18 = scalar_lea.hbm %s457_s3, 16  ;;  %p1317_p8 = scmp.lt.u32.totalorder %s457_s3, %s2373_s2 }
 0x140   : > { %p1313_p11 = scmp.ne.s32.totalorder %s457_s3, %s1312_s18  ;;  %p1318_p1 = scmp.lt.u32.totalorder %s1782_s21, %s1312_s18 }
 0x141   : > { %p1320_p4 = scmp.lt.u32.totalorder %s1312_s18, %s457_s3 }
 0x142   : > { %p1314_p12 = pnand %p1313_p11, %p969_p10  ;;  %p1319_p3 = por %p1318_p1, %p1317_p8 }
 0x144   : > { %p1315_p0 = pneg %p1314_p12  ;;  %p1321_p6 = por %p1320_p4, %p1319_p3 }
 0x146   : > { %p1322_p7 = pnand %p1321_p6, %p1315_p0 }
 0x148   : > { %1325 = shalt.err (!%p1322_p7)  }
 0x149   : > { %s1326_s7 = scalar_lea.vmem %s2089_s28, 16  ;;  %p1333_p2 = scmp.lt.s32.totalorder %s2089_s28, %s1765_s14 }
 0x14a   : > { %p1327_p9 = scmp.ne.s32.totalorder %s2089_s28, %s1326_s7  ;;  %p1334_p11 = scmp.lt.s32.totalorder %s1793_s0, %s1326_s7 }
 0x14c   : > { %p1328_p5 = pnand %p1327_p9, %p969_p10  ;;  %p1335_p12 = por %p1334_p11, %p1333_p2 }
 0x14e   : > { %p1329_p13 = pneg %p1328_p5 }
 0x150   : > { %p1336_p1 = pnand %p1335_p12, %p1329_p13 }
 0x152   : > { %1339 = shalt.err (!%p1336_p1)  }
 0x153   : > { %943 = dma.hbm_to_vmem [thread:$0]  (%p969_p10), %s457_s3, 16, %s2089_s28, %s2057_s10 }
 0x154   : > { %s780_s27 = scalar_lea.vmem %s2040_s5, 3 [#allocation2]  ;;  %s883_s20 = sshll.u32 %s2096_s9, 4 }
 0x155   : > { %s2123_s25 = scalar_select %p969_p10, [#allocation5], [#allocation53] }
 0x156   : > { %s502_s30 = sadd.s32 %s885_s8, %s501_s1  ;;  %s481_s22 = scalar_lea.hbm %s2373_s2, %s883_s20 }
 0x157   : > { %s2129_s16 = sshll.u32 %s780_s27, 4  ;;  %s1340_s24 = scalar_lea.hbm %s481_s22, 16  ;;  %s516_s16 = int_to_ptr.vmem [resolvable:$true] %s2129_s16 }
 0x158   : > { %p1341_p0 = scmp.ne.s32.totalorder %s481_s22, %s1340_s24  ;;  %p1345_p4 = scmp.lt.u32.totalorder %s481_s22, %s2373_s2 }
 0x159   : > { %p1346_p6 = scmp.lt.u32.totalorder %s1782_s21, %s1340_s24  ;;  %p1348_p9 = scmp.lt.u32.totalorder %s1340_s24, %s481_s22 }
 0x15a   : > { %p1342_p8 = pnand %p1341_p0, %p969_p10 }
 0x15b   : > { %p1347_p7 = por %p1346_p6, %p1345_p4 }
 0x15c   : > { %p1343_p3 = pneg %p1342_p8 }
 0x15d   : > { %p1349_p5 = por %p1348_p9, %p1347_p7 }
 0x15f   : > { %p1350_p13 = pnand %p1349_p5, %p1343_p3 }
 0x161   : > { %1353 = shalt.err (!%p1350_p13)  }
 0x162   : > { %s1354_s9 = scalar_lea.vmem %s492_s13, 16  ;;  %p1361_p1 = scmp.lt.s32.totalorder %s492_s13, %s1765_s14 }
 0x163   : > { %p1355_p2 = scmp.ne.s32.totalorder %s492_s13, %s1354_s9  ;;  %p1362_p0 = scmp.lt.s32.totalorder %s1793_s0, %s1354_s9 }
 0x165   : > { %p1356_p11 = pnand %p1355_p2, %p969_p10  ;;  %p1363_p8 = por %p1362_p0, %p1361_p1 }
 0x167   : > { %p1357_p12 = pneg %p1356_p11 }
 0x169   : > { %p1364_p4 = pnand %p1363_p8, %p1357_p12 }
 0x16b   : > { %1367 = shalt.err (!%p1364_p4)  }
 0x16c   : > { %946 = dma.hbm_to_vmem [thread:$0]  (%p969_p10), %s481_s22, 16, %s492_s13, %s2057_s10 }
 0x16d   : > { %s2473_s30 = smov (!%p969_p10, %s502_s30), 0  ;;  %s2428_s8 = sshra.s32 %s1863_s6, 7 }
 0x16e   : > { %s522_s3 = sadd.s32 %s2428_s8, %s2000_s17  ;;  %s525_s1 = sand.u32 127, %s1863_s6 }
 0x16f   : > { %s503_s18 = sld [smem:[%s2123_s25 + %s2473_s30]]  ;;  %s888_s15 = sshll.u32 %s522_s3, 7 }
 0x170   : > { %s526_s7 = sadd.s32 %s888_s15, %s525_s1  ;;  %s785_s27 = scalar_lea.vmem %s2040_s5, 4 [#allocation2] }
 0x171   : > { %s950_s20 = scalar_select %p969_p10, [#allocation5], [#allocation54] }
 0x172   : > { %s2475_s7 = smov (!%p969_p10, %s526_s7), 0  ;;  %s568_s29 = sshra.s32 %s1929_s11, 7 }
 0x173   : > { %s592_s23 = sshra.s32 %s1962_s19, 7  ;;  %s2159_s13 = sld [smem:[%s950_s20 + %s2475_s7]] }
 0x174   : > { %s539_s24 = sshll.u32 %s785_s27, 4  ;;  %s2429_s25 = sshra.s32 %s1896_s12, 7  ;;  %s540_s24 = int_to_ptr.vmem [resolvable:$true] %s539_s24 }
 0x175   : > { %s886_s22 = sshll.u32 %s503_s18, 4  ;;  %s546_s30 = sadd.s32 %s2429_s25, %s2000_s17 }
 0x176   : > { %s505_s6 = scalar_lea.hbm %s2373_s2, %s886_s22 }
 0x177   : > { %s1368_s9 = scalar_lea.hbm %s505_s6, 16  ;;  %p1373_p9 = scmp.lt.u32.totalorder %s505_s6, %s2373_s2 }
 0x178   : > { %p1369_p3 = scmp.ne.s32.totalorder %s505_s6, %s1368_s9  ;;  %p1374_p5 = scmp.lt.u32.totalorder %s1782_s21, %s1368_s9 }
 0x179   : > { %p1376_p2 = scmp.lt.u32.totalorder %s1368_s9, %s505_s6 }
 0x17a   : > { %p1370_p6 = pnand %p1369_p3, %p969_p10  ;;  %p1375_p13 = por %p1374_p5, %p1373_p9 }
 0x17c   : > { %p1371_p7 = pneg %p1370_p6  ;;  %p1377_p11 = por %p1376_p2, %p1375_p13 }
 0x17e   : > { %p1378_p12 = pnand %p1377_p11, %p1371_p7 }
 0x180   : > { %1381 = shalt.err (!%p1378_p12)  }
 0x181   : > { %s1382_s1 = scalar_lea.vmem %s516_s16, 16  ;;  %p1389_p4 = scmp.lt.s32.totalorder %s516_s16, %s1765_s14 }
 0x182   : > { %p1383_p1 = scmp.ne.s32.totalorder %s516_s16, %s1382_s1  ;;  %p1390_p3 = scmp.lt.s32.totalorder %s1793_s0, %s1382_s1 }
 0x184   : > { %p1384_p0 = pnand %p1383_p1, %p969_p10  ;;  %p1391_p6 = por %p1390_p3, %p1389_p4 }
 0x186   : > { %p1385_p8 = pneg %p1384_p0 }
 0x188   : > { %p1392_p5 = pnand %p1391_p6, %p1385_p8 }
 0x18a   : > { %1395 = shalt.err (!%p1392_p5)  }
 0x18b   : > { %949 = dma.hbm_to_vmem [thread:$0]  (%p969_p10), %s505_s6, 16, %s516_s16, %s2057_s10 }
 0x18c   : > { %s891_s18 = sshll.u32 %s546_s30, 7  ;;  %s549_s15 = sand.u32 127, %s1896_s12 }
 0x18d   : > { %s790_s7 = scalar_lea.vmem %s2040_s5, 5 [#allocation2]  ;;  %s889_s27 = sshll.u32 %s2159_s13, 4 }
 0x18e   : > { %s550_s20 = sadd.s32 %s891_s18, %s549_s15  ;;  %s529_s28 = scalar_lea.hbm %s2373_s2, %s889_s27 }
 0x18f   : > { %s2186_s25 = sshll.u32 %s790_s7, 4  ;;  %s1396_s9 = scalar_lea.hbm %s529_s28, 16  ;;  %s2215_s25 = int_to_ptr.vmem [resolvable:$true] %s2186_s25 }
 0x190   : > { %p1397_p7 = scmp.ne.s32.totalorder %s529_s28, %s1396_s9  ;;  %p1401_p2 = scmp.lt.u32.totalorder %s529_s28, %s2373_s2 }
 0x191   : > { %p1402_p11 = scmp.lt.u32.totalorder %s1782_s21, %s1396_s9  ;;  %p1404_p1 = scmp.lt.u32.totalorder %s1396_s9, %s529_s28 }
 0x192   : > { %p1398_p9 = pnand %p1397_p7, %p969_p10 }
 0x193   : > { %p1403_p12 = por %p1402_p11, %p1401_p2 }
 0x194   : > { %p1399_p13 = pneg %p1398_p9 }
 0x195   : > { %p1405_p0 = por %p1404_p1, %p1403_p12 }
 0x197   : > { %p1406_p8 = pnand %p1405_p0, %p1399_p13 }
 0x199   : > { %1409 = shalt.err (!%p1406_p8)  }
 0x19a   : > { %s1410_s12 = scalar_lea.vmem %s540_s24, 16  ;;  %p1417_p5 = scmp.lt.s32.totalorder %s540_s24, %s1765_s14 }
 0x19b   : > { %p1411_p4 = scmp.ne.s32.totalorder %s540_s24, %s1410_s12  ;;  %p1418_p7 = scmp.lt.s32.totalorder %s1793_s0, %s1410_s12 }
 0x19d   : > { %p1412_p3 = pnand %p1411_p4, %p969_p10  ;;  %p1419_p9 = por %p1418_p7, %p1417_p5 }
 0x19f   : > { %p1413_p6 = pneg %p1412_p3 }
 0x1a1   : > { %p1420_p2 = pnand %p1419_p9, %p1413_p6 }
 0x1a3   : > { %1423 = shalt.err (!%p1420_p2)  }
 0x1a4   : > { %952 = dma.hbm_to_vmem [thread:$0]  (%p969_p10), %s529_s28, 16, %s540_s24, %s2057_s10 }
 0x1a5   : > { %s953_s16 = scalar_select %p969_p10, [#allocation5], [#allocation55] }
 0x1a6   : > { %s2477_s20 = smov (!%p969_p10, %s550_s20), 0  ;;  %s570_s13 = sadd.s32 %s568_s29, %s2000_s17 }
 0x1a7   : > { %s573_s6 = sand.u32 127, %s1929_s11  ;;  %s551_s30 = sld [smem:[%s953_s16 + %s2477_s20]] }
 0x1a8   : > { %s894_s1 = sshll.u32 %s570_s13, 7  ;;  %s795_s15 = scalar_lea.vmem %s2040_s5, 6 [#allocation2] }
 0x1a9   : > { %s574_s18 = sadd.s32 %s894_s1, %s573_s6  ;;  %s2220_s24 = sadd.s32 %s592_s23, %s2000_s17 }
 0x1aa   : > { %s956_s7 = scalar_select %p969_p10, [#allocation5], [#allocation56] }
 0x1ab   : > { %s2479_s18 = smov (!%p969_p10, %s574_s18), 0  ;;  %s587_s29 = sshll.u32 %s795_s15, 4  ;;  %s588_s29 = int_to_ptr.vmem [resolvable:$true] %s587_s29 }
 0x1ac   : > { %s2222_s27 = sld [smem:[%s956_s7 + %s2479_s18]]  ;;  %s897_s20 = sshll.u32 %s2220_s24, 7 }
 0x1ad   : > { %s892_s11 = sshll.u32 %s551_s30, 4  ;;  %s597_s9 = sand.u32 127, %s1962_s19 }
 0x1ae   : > { %s553_s28 = scalar_lea.hbm %s2373_s2, %s892_s11 }
 0x1af   : > { %s1424_s8 = scalar_lea.hbm %s553_s28, 16  ;;  %p1429_p1 = scmp.lt.u32.totalorder %s553_s28, %s2373_s2 }
 0x1b0   : > { %p1425_p13 = scmp.ne.s32.totalorder %s553_s28, %s1424_s8  ;;  %p1430_p0 = scmp.lt.u32.totalorder %s1782_s21, %s1424_s8 }
 0x1b1   : > { %p1432_p4 = scmp.lt.u32.totalorder %s1424_s8, %s553_s28 }
 0x1b2   : > { %p1426_p11 = pnand %p1425_p13, %p969_p10  ;;  %p1431_p8 = por %p1430_p0, %p1429_p1 }
 0x1b4   : > { %p1427_p12 = pneg %p1426_p11  ;;  %p1433_p3 = por %p1432_p4, %p1431_p8 }
 0x1b6   : > { %p1434_p6 = pnand %p1433_p3, %p1427_p12 }
 0x1b8   : > { %1437 = shalt.err (!%p1434_p6)  }
 0x1b9   : > { %s1438_s19 = scalar_lea.vmem %s2215_s25, 16  ;;  %p1445_p2 = scmp.lt.s32.totalorder %s2215_s25, %s1765_s14 }
 0x1ba   : > { %p1439_p5 = scmp.ne.s32.totalorder %s2215_s25, %s1438_s19  ;;  %p1446_p13 = scmp.lt.s32.totalorder %s1793_s0, %s1438_s19 }
 0x1bc   : > { %p1440_p7 = pnand %p1439_p5, %p969_p10  ;;  %p1447_p11 = por %p1446_p13, %p1445_p2 }
 0x1be   : > { %p1441_p9 = pneg %p1440_p7 }
 0x1c0   : > { %p1448_p0 = pnand %p1447_p11, %p1441_p9 }
 0x1c2   : > { %1451 = shalt.err (!%p1448_p0)  }
 0x1c3   : > { %955 = dma.hbm_to_vmem [thread:$0]  (%p969_p10), %s553_s28, 16, %s2215_s25, %s2057_s10 }
 0x1c4   : > { %s860_s23 = sshll.u32 %s1738_s26, 3  ;;  %s895_s13 = sshll.u32 %s2222_s27, 4 }
 0x1c5   : > { %s2249_s16 = scalar_select %p969_p10, [#allocation5], [#allocation57] }
 0x1c6   : > { %s598_s6 = sadd.s32 %s897_s20, %s597_s9  ;;  %s2430_s18 = sld [smem:[#allocation77_spill]] }
 0x1c7   : > { %s577_s11 = scalar_lea.hbm %s2373_s2, %s895_s13 }
 0x1c8   : > { %s1452_s22 = scalar_lea.hbm %s577_s11, 16  ;;  %p1457_p4 = scmp.lt.u32.totalorder %s577_s11, %s2373_s2 }
 0x1c9   : > { %p1453_p12 = scmp.ne.s32.totalorder %s577_s11, %s1452_s22  ;;  %p1458_p3 = scmp.lt.u32.totalorder %s1782_s21, %s1452_s22 }
 0x1ca   : > { %p1460_p5 = scmp.lt.u32.totalorder %s1452_s22, %s577_s11 }
 0x1cb   : > { %p1454_p1 = pnand %p1453_p12, %p969_p10  ;;  %p1459_p6 = por %p1458_p3, %p1457_p4 }
 0x1cc   : > { %s272_s15 = scalar_lea.vmem %s2430_s18, %s860_s23 }
 0x1cd   : > { %p1455_p8 = pneg %p1454_p1  ;;  %p1461_p7 = por %p1460_p5, %p1459_p6 }
 0x1cf   : > { %p1462_p9 = pnand %p1461_p7, %p1455_p8 }
 0x1d1   : > { %1465 = shalt.err (!%p1462_p9)  }
 0x1d2   : > { %s1466_s27 = scalar_lea.vmem %s588_s29, 16  ;;  %p1473_p0 = scmp.lt.s32.totalorder %s588_s29, %s1765_s14 }
 0x1d3   : > { %p1467_p2 = scmp.ne.s32.totalorder %s588_s29, %s1466_s27  ;;  %p1474_p12 = scmp.lt.s32.totalorder %s1793_s0, %s1466_s27 }
 0x1d5   : > { %p1468_p13 = pnand %p1467_p2, %p969_p10  ;;  %p1475_p1 = por %p1474_p12, %p1473_p0 }
 0x1d7   : > { %p1469_p11 = pneg %p1468_p13 }
 0x1d9   : > { %p1476_p3 = pnand %p1475_p1, %p1469_p11 }
 0x1db   : > { %1479 = shalt.err (!%p1476_p3)  }
 0x1dc   : > { %958 = dma.hbm_to_vmem [thread:$0]  (%p969_p10), %s577_s11, 16, %s588_s29, %s2057_s10  ;;  %v616_v5 = vld [vmem:[%s272_s15] sm:$0xff]  ;;  %v627_v6 = vpop.permute.xlu0 %626 }
 0x1dd   : > { %s2481_s6 = smov (!%p969_p10, %s598_s6), 0  ;;  %s800_s20 = scalar_lea.vmem %s2040_s5, 7 [#allocation2]  ;;  %vm628_vm1 = vcmp.eq.s32.totalorder %v627_v6, 1 }
 0x1de   : > { %s2431_s9 = sld [smem:[#allocation78_spill]]  ;;  %s611_s23 = sshll.u32 %s800_s20, 4  ;;  %s612_s23 = int_to_ptr.vmem [resolvable:$true] %s611_s23 }
 0x1df   : > { %s599_s19 = sld [smem:[%s2249_s16 + %s2481_s6]] }
 0x1e4   : > { %s2432_s3 = smov %s2431_s9  ;;  %v900_v3 = vld [vmem:[%s2431_s9] ss:$0 sm:$0xff] }
 0x1e5   : > { %v901_v4 = vld [vmem:[%s2432_s3 + $0x1] ss:$0 sm:$0xff]  ;;  %s898_s29 = sshll.u32 %s599_s19, 4 }
 0x1e6   : > { %v633_v7 = vsel %vm628_vm1, %v901_v4, %v900_v3  ;;  %s601_s30 = scalar_lea.hbm %s2373_s2, %s898_s29 }
 0x1e7   : > { %v634_v8 = vadd.f32 %v633_v7, %v616_v5  ;;  %s1480_s1 = scalar_lea.hbm %s601_s30, 16  ;;  %p1485_p5 = scmp.lt.u32.totalorder %s601_s30, %s2373_s2 }
 0x1e8   : > { %p1481_p8 = scmp.ne.s32.totalorder %s601_s30, %s1480_s1  ;;  %p1486_p7 = scmp.lt.u32.totalorder %s1782_s21, %s1480_s1 }
 0x1e9   : > { %p1488_p2 = scmp.lt.u32.totalorder %s1480_s1, %s601_s30 }
 0x1ea   : > { %p1482_p4 = pnand %p1481_p8, %p969_p10  ;;  %p1487_p9 = por %p1486_p7, %p1485_p5 }
 0x1ec   : > { %p1483_p6 = pneg %p1482_p4  ;;  %p1489_p13 = por %p1488_p2, %p1487_p9 }
 0x1ee   : > { %p1490_p11 = pnand %p1489_p13, %p1483_p6 }
 0x1f0   : > { %1493 = shalt.err (!%p1490_p11)  }
 0x1f1   : > { %s1494_s16 = scalar_lea.vmem %s612_s23, 16  ;;  %p1501_p3 = scmp.lt.s32.totalorder %s612_s23, %s1765_s14 }
 0x1f2   : > { %p1495_p0 = scmp.ne.s32.totalorder %s612_s23, %s1494_s16  ;;  %p1502_p8 = scmp.lt.s32.totalorder %s1793_s0, %s1494_s16 }
 0x1f4   : > { %p1496_p12 = pnand %p1495_p0, %p969_p10  ;;  %p1503_p4 = por %p1502_p8, %p1501_p3 }
 0x1f6   : > { %p1497_p1 = pneg %p1496_p12 }
 0x1f8   : > { %p1504_p5 = pnand %p1503_p4, %p1497_p1 }
 0x1fa   : > { %1507 = shalt.err (!%p1504_p5)  }
 0x1fb   : > { %s2433_s21 = sld [smem:[#allocation74_spill]]  ;;  %s2434_s6 = sld [smem:[#allocation75_spill]] }
 0x1fc   : > { %961 = dma.hbm_to_vmem [thread:$0]  (%p969_p10), %s601_s30, 16, %s612_s23, %s2057_s10 }
 0x201   : > { %s260_s15 = scalar_lea.vmem [#allocation6], %s2433_s21  ;;  %s2435_s24 = sshll.u32 %s2434_s6, 3 }
 0x202   : > { %s636_s11 = scalar_lea.vmem [#allocation2], %s2435_s24  ;;  %s637_s22 = scalar_lea.sflag [#allocation3], %s2434_s6 }
 0x203   : > { %1570 = dma.done.wait %s637_s22, 128 }
 0x204   : > { %1571 = vsyncadd %s637_s22, 4294967168  ;;  %s2436_s26 = sld [smem:[#allocation64_spill]]  ;;  %v641_v9 = vld [vmem:[%s636_s11] sm:$0xff]  ;;  %s2437_s14 = sld [smem:[#allocation65_spill]] }
 0x205   : > { %v642_v10 = vadd.f32 %v641_v9, %v634_v8  ;;  %s2438_s0 = sld [smem:[#allocation62_spill]]  ;;  %s2439_s10 = sld [smem:[#allocation70_spill]] }
 0x206   : > { %s2440_s4 = sld [smem:[#allocation79_spill]]  ;;  %s2441_s8 = sld [smem:[#allocation80_spill]] }
 0x207   : > { %645 = vadd.xlane.f32.xlu0 %v642_v10  ;;  %v648_v11 = vmul.f32 %v642_v10, %v642_v10  ;;  %s690_s19 = sshll.u32 %s260_s15, 4  ;;  %s2442_s13 = sld [smem:[#allocation81_spill]]  ;;  %s2316_s19 = int_to_ptr.vmem [resolvable:$true] %s690_s19 }
 0x208   : > { %s1508_s18 = scalar_lea.vmem %s2316_s19, 128  ;;  %s1618_s7 = smov [#allocation6]  }
 0x209   : > { %p1509_p10 = scmp.ne.s32.totalorder %s2316_s19, %s1508_s18  ;;  %s1512_s16 = sshll.u32 %s1618_s7, 4  ;;  %s1513_s16 = int_to_ptr.vmem [resolvable:$false] %s1512_s16 }
 0x20a   : > { %s906_s17 = sshll.u32 %s2436_s26, 1  ;;  %s1514_s6 = scalar_lea.vmem %s1513_s16, 256 }
 0x20b   : > { %649 = vadd.xlane.f32.xlu0 %v648_v11  ;;  %s686_s25 = sadd.s32 %s2437_s14, %s906_s17  ;;  %s2443_s30 = sand.u32 1, %s2438_s0  }
 0x20c   : > { %v903_v22 = vld [vmem:[%s2440_s4] ss:$0 sm:$0xff]  ;;  %s907_s12 = sshll.u32 %s686_s25, 7  ;;  %s675_s1 = scalar_lea.sflag [#allocation7], %s2443_s30 }
 0x20d   : > { %v904_v24 = vld [vmem:[%s2441_s8] ss:$0 sm:$0xff]  ;;  %s2314_s5 = scalar_lea.hbm %s2442_s13, %s907_s12  ;;  %p2444_p6 = scmp.ne.s32.totalorder %s2439_s10, 0 }
 0x20e   : > { %p1515_p2 = scmp.lt.s32.totalorder %s2316_s19, %s1513_s16  ;;  %p1516_p13 = scmp.lt.s32.totalorder %s1514_s6, %s1508_s18 }
 0x20f   : > { %p1510_p7 = pnand %p1509_p10, %p2444_p6 }
 0x210   : > { %p1517_p11 = por %p1516_p13, %p1515_p2 }
 0x211   : > { %p1511_p9 = pneg %p1510_p7 }
 0x213   : > { %p1518_p0 = pnand %p1517_p11, %p1511_p9 }
 0x294   : > { %v646_v12 = vpop.xlane.xlu0 %645 }
 0x295   : > { %v647_v13 = vmul.f32 0.0078125, %v646_v12 }
 0x297   : > { %v652_v15 = vmul.f32 %v647_v13, %v647_v13  ;;  %v655_v20 = vsub.f32 %v642_v10, %v647_v13 }
 0x298   : > { %v650_v14 = vpop.xlane.xlu0 %649 }
 0x299   : > { %v651_v16 = vmul.f32 0.0078125, %v650_v14 }
 0x29b   : > { %v653_v17 = vsub.f32 %v651_v16, %v652_v15 }
 0x29d   : > { %v654_v18 = vmax.f32 %v653_v17, 0.0 }
 0x29f   : > { %v656_v19 = vadd.f32 1e-12, %v654_v18 }
 0x2a1   : > { %1046 = vrsqrt.f32 %v656_v19 }
 0x2ab   : > { %v1047_v21 = vpop.eup %1046 }
 0x2ac   : > { %v658_v23 = vmul.f32 %v1047_v21, %v655_v20 }
 0x2ae   : > { %v665_v25 = vmul.f32 %v903_v22, %v658_v23 }
 0x2b0   : > { %v672_v26 = vadd.f32 %v904_v24, %v665_v25 }
 0x2b2   : > { %673 = vst [vmem:[%s260_s15] sm:$0xff] %v672_v26 }
 0x2b3   : > { %1521 = shalt.err (!%p1518_p0)
}
 0x2b4   : > { %s1522_s21 = scalar_lea.hbm %s2314_s5, 128  ;;  %s1526_s11 = scalar_lea.hbm %s2442_s13, 512 }
 0x2b5   : > { %p1523_p12 = scmp.ne.s32.totalorder %s2314_s5, %s1522_s21  ;;  %p1527_p8 = scmp.lt.u32.totalorder %s2314_s5, %s2442_s13 }
 0x2b6   : > { %p1528_p4 = scmp.lt.u32.totalorder %s1526_s11, %s1522_s21  ;;  %p1530_p10 = scmp.lt.u32.totalorder %s1522_s21, %s2314_s5 }
 0x2b7   : > { %p1524_p1 = pnand %p1523_p12, %p2444_p6 }
 0x2b8   : > { %p1529_p5 = por %p1528_p4, %p1527_p8 }
 0x2b9   : > { %p1525_p3 = pneg %p1524_p1 }
 0x2ba   : > { %p1531_p7 = por %p1530_p10, %p1529_p5 }
 0x2bc   : > { %p1532_p9 = pnand %p1531_p7, %p1525_p3 }
 0x2be   : > { %1535 = shalt.err (!%p1532_p9)
}
 0x2bf   : > { %962 = dma.vmem_to_hbm [thread:$0]  (%p2444_p6), %s2316_s19, 128, %s2314_s5, %s675_s1  }
 0x2c0 PF: > { %s2445_s14 = sld [smem:[#allocation68_spill]]  ;;  %s2446_s0 = sld [smem:[#allocation61_spill]] }
 0x2c1   : > { %s2447_s17 = sld [smem:[#allocation72_spill]] }
 0x2c6   : > { %p970_p2 = scmp.ge.s32.totalorder %s2445_s14, 2  ;;  %s702_s25 = sand.u32 1, %s2446_s0  }
 0x2c7   : > { %p2448_p13 = scmp.ne.s32.totalorder %s2447_s17, 0  ;;  %s703_s27 = scalar_lea.sflag [#allocation7], %s702_s25 }
 0x2c9   : > { %p965_p11 = pnand %p970_p2, %p2448_p13 }
 0x2cb   : > { %1573 = dma.done.wait (!%p965_p11), %s703_s27, 128  }
 0x2cc   : > { %1575 = vsyncadd (!%p965_p11), %s703_s27, 4294967168  ;;  %s26_s12 = sadd.s32 1, %s2445_s14   ;;  %s2449_s29 = sld [smem:[#allocation62_spill]] }
 0x2cd   : > { %p23_p0 = scmp.ge.s32.totalorder %s26_s12, 6   ;;  %s2450_s30 = sld [smem:[#allocation63_spill]] }
 0x2ce   : > { %s2451_s0 = sld [smem:[#allocation73_spill]]  ;;  %s2452_s8 = sld [smem:[#allocation66_spill]] }
 0x2cf   : > { %s2453_s9 = sld [smem:[#allocation67_spill]]  ;;  %s2454_s10 = sld [smem:[#allocation69_spill]] }
 0x2d0   : > { %s2455_s11 = sld [smem:[#allocation71_spill]]  ;;  %25 = sbr.rel (!%p23_p0) target bundleno = 22 (0x16), region = 185 }
 0x2d7   :  { %708 = vsyncpa [#allocation7], 1 }
 0x2d8   :  { %710 = vsyncpa [#allocation7 + $0x1], 1 }
 0x2d9   :  { %711 = vsyncmov [#allocation3] }
 0x2dc   :  { %s712_s20 = vpop.sfrf %711 }
 0x2dd   :  { %p910_p6 = scmp.ne.s32.totalorder %s712_s20, 0 }
 0x2df   :  { %716 = shalt.err (%p910_p6)  }
 0x2e0   :  { %718 = vsyncmov [#allocation3 + $0x1] }
 0x2e3   :  { %s719_s4 = vpop.sfrf %718 }
 0x2e4   :  { %p911_p12 = scmp.ne.s32.totalorder %s719_s4, 0 }
 0x2e6   :  { %723 = shalt.err (%p911_p12)  }

</bundles_post_ra>
